<compile_context>
chip_gen: v6e
topology: v6e:2x2x1
jax: 0.10.0
libtpu: 0.0.40
codegen_flags: <defaults>
</compile_context>

<pallas_src>
import functools

import jax
import jax.numpy as jnp
from jax.experimental import pallas as pl
from jax.experimental.pallas import tpu as pltpu


def _round_up(v, m):
    return (v + m - 1) // m * m


# ----------------------------------------------------------------------------
# Fused kernel: one grid step == one image, flattened-spatial-on-lanes layout.
# ----------------------------------------------------------------------------
def _gcn_kernel(xw_ref,
                w1a_ref, b1a_ref, w1b_ref, b1b_ref,
                w2a_ref, b2a_ref, w2b_ref, b2b_ref,
                w3_ref, b3_ref,
                out_ref,
                *, k, pad, Wp, H, W, SH, L_A, L_OUT):
    """GCN block for one image.

    xw_ref : (C8, LW)    zero-padded flat image; flat position q lives at
                         lane q + 2*SH (so all shifted views are in-bounds).
    w*_ref : (C8, k*C8)  tap-stacked conv weights, [co, t*C8 + ci].
    b*_ref : (C8, 1)     biases (f32).
    w3_ref : (C8, C8)    1x1-conv weights transposed, [co, ci].
    out_ref: (C8, L_OUT) flat position p at lane p (valid for p < Hp*Wp).
    """
    f32 = jnp.float32

    def in_view(s):                      # input shifted by s, stage-a width
        st = SH + s                      # stage-a index i <-> pos q = i - SH
        return xw_ref[:, st:st + L_A]

    def mid_view(xa, s):                 # stage-a value shifted by s, out width
        st = SH + s                      # output index p <-> pos p
        return xa[:, st:st + L_OUT]

    def conv(parts, w_ref, b_ref):
        # One contraction per stage: concat k shifted views on sublanes
        # (8-row pieces -> aligned) and hit the MXU once.
        src = jnp.concatenate(parts, axis=0)                    # (k*C8, width)
        w = w_ref[...].astype(src.dtype)
        acc = jnp.dot(w, src, preferred_element_type=f32)       # (C8, width)
        return jnp.maximum(acc + b_ref[...], 0.0)

    # Validity masks over the stage-a domain (flat pos q = i - SH).
    i = jax.lax.broadcasted_iota(jnp.int32, (1, L_A), 1)
    hmask = ((i >= SH + pad * Wp) & (i < SH + (pad + H) * Wp)).astype(f32)
    # col = i mod Wp via float reciprocal (avoids integer-div lowering); the
    # only possible rounding confusion is col 0 <-> Wp, both invalid anyway.
    col = i - jnp.floor(i.astype(f32) * (1.0 / Wp)).astype(jnp.int32) * Wp
    wmask = ((col >= pad) & (col < pad + W)).astype(f32)

    # branch 1: (1,k) W-conv -> relu -> (k,1) H-conv -> relu
    x1a = conv([in_view(t - pad) for t in range(k)], w1a_ref, b1a_ref) * hmask
    y1 = conv([mid_view(x1a, (t - pad) * Wp) for t in range(k)],
              w1b_ref, b1b_ref)

    # branch 2: (k,1) H-conv -> relu -> (1,k) W-conv -> relu
    x2a = conv([in_view((t - pad) * Wp) for t in range(k)],
               w2a_ref, b2a_ref) * wmask
    y2 = conv([mid_view(x2a, t - pad) for t in range(k)], w2b_ref, b2b_ref)

    # 1x1 conv once on the branch sum, then bias + residual.
    z = jnp.dot(w3_ref[...].astype(f32), y1 + y2, preferred_element_type=f32)
    resid = xw_ref[:, 2 * SH:2 * SH + L_OUT].astype(f32)
    out_ref[...] = (resid + z + b3_ref[...]).astype(out_ref.dtype)


# ----------------------------------------------------------------------------
# Wrapper: NCHW padding / flattening, weight tap-stacking, pallas_call.
# ----------------------------------------------------------------------------
def gcn_forward(x_nchw, params, *, storage_dtype=None):
    """GCN forward. x_nchw: (N, C, H, W). Returns same shape/dtype."""
    N, C, H, W = x_nchw.shape
    k = params["c1a_w"].shape[0]
    assert k % 2 == 1, "GCN separable convs assume odd kernel size"
    pad = (k - 1) // 2
    Hp, Wp = H + 2 * pad, W + 2 * pad
    Lin = Hp * Wp                      # flattened padded image length
    SH = pad * Wp                      # largest flat shift (H-direction tap)
    L_OUT = _round_up(Lin, 128)        # lane-dense output width
    L_A = L_OUT + 2 * SH               # stage-a compute width
    LW = _round_up(L_OUT + 4 * SH, 128)  # wide input width (all views in-bounds)
    C8 = _round_up(C, 8)               # channels padded to full sublane group

    st_dtype = storage_dtype if storage_dtype is not None else x_nchw.dtype

    # Input: spatial zero-pad, flatten (h,w), pad channels to C8, place the
    # flat image at lane offset 2*SH inside an all-zero wide buffer.
    xpad = jnp.pad(x_nchw, ((0, 0), (0, 0), (pad, pad), (pad, pad)))
    xflat = xpad.reshape(N, C, Lin).astype(st_dtype)
    xwide = jnp.pad(xflat, ((0, 0), (0, C8 - C), (2 * SH, LW - 2 * SH - Lin)))

    def stack_w(w):  # (k, Cin, Cout) -> (C8, k*C8) with [co, t*C8 + ci]
        wp = jnp.zeros((k, C8, C8), w.dtype).at[:, :C, :C].set(w)
        return jnp.transpose(wp, (2, 0, 1)).reshape(C8, k * C8).astype(st_dtype)

    def pad_b(b):    # (C,) -> (C8, 1) f32
        return jnp.zeros((C8, 1), jnp.float32).at[:C, 0].set(
            b.astype(jnp.float32))

    w3T = jnp.zeros((C8, C8), jnp.float32).at[:C, :C].set(
        params["c3_w"].T.astype(jnp.float32))

    kernel = functools.partial(_gcn_kernel, k=k, pad=pad, Wp=Wp, H=H, W=W,
                               SH=SH, L_A=L_A, L_OUT=L_OUT)

    full2 = lambda shape: pl.BlockSpec(shape, lambda n: (0, 0))

    out_flat = pl.pallas_call(
        kernel,
        out_shape=jax.ShapeDtypeStruct((N, C8, L_OUT), x_nchw.dtype),
        grid=(N,),
        in_specs=[
            pl.BlockSpec((None, C8, LW), lambda n: (n, 0, 0)),   # padded image
            full2((C8, k * C8)), full2((C8, 1)),                 # conv1 (1,k)
            full2((C8, k * C8)), full2((C8, 1)),                 # conv1 (k,1)
            full2((C8, k * C8)), full2((C8, 1)),                 # conv2 (k,1)
            full2((C8, k * C8)), full2((C8, 1)),                 # conv2 (1,k)
            full2((C8, C8)), full2((C8, 1)),                     # conv3 1x1
        ],
        out_specs=pl.BlockSpec((None, C8, L_OUT), lambda n: (n, 0, 0)),
        compiler_params=pltpu.CompilerParams(
            dimension_semantics=("parallel",)),
    )(xwide,
      stack_w(params["c1a_w"]), pad_b(params["c1a_b"]),
      stack_w(params["c1b_w"]), pad_b(params["c1b_b"]),
      stack_w(params["c2a_w"]), pad_b(params["c2a_b"]),
      stack_w(params["c2b_w"]), pad_b(params["c2b_b"]),
      w3T, pad_b(params["c3_b"]))

    # Drop channel padding, drop the lane tail, un-flatten, crop spatial pads.
    out = out_flat[:, :C, :Lin].reshape(N, C, Hp, Wp)
    return out[:, :, pad:pad + H, pad:pad + W]


# ----------------------------------------------------------------------------
# Pure-JAX reference (for correctness checking)
# ----------------------------------------------------------------------------
def _conv_ref(x, w_hwio, b, padding):
    out = jax.lax.conv_general_dilated(
        x, w_hwio, (1, 1), padding, dimension_numbers=("NHWC", "HWIO", "NHWC"))
    return out + b[None, None, None, :]


def gcn_reference(x_nchw, p):
    x = jnp.transpose(x_nchw, (0, 2, 3, 1))
    k = p["c1a_w"].shape[0]
    pad = (k - 1) // 2
    relu = lambda v: jnp.maximum(v, 0.0)
    x1 = relu(_conv_ref(x, p["c1a_w"][None], p["c1a_b"], ((0, 0), (pad, pad))))
    x1 = relu(_conv_ref(x1, p["c1b_w"][:, None], p["c1b_b"], ((pad, pad), (0, 0))))
    x2 = relu(_conv_ref(x, p["c2a_w"][:, None], p["c2a_b"], ((pad, pad), (0, 0))))
    x2 = relu(_conv_ref(x2, p["c2b_w"][None], p["c2b_b"], ((0, 0), (pad, pad))))
    x3 = _conv_ref(x1 + x2, p["c3_w"][None, None], p["c3_b"], ((0, 0), (0, 0)))
    return jnp.transpose(x + x3, (0, 3, 1, 2))


# ----------------------------------------------------------------------------
if __name__ == "__main__":
    N, C, H, W, k = 2, 4, 16, 16, 7
    key = jax.random.PRNGKey(0)
    keys = jax.random.split(key, 11)

    def mk(kk, shape, scale=0.1):
        return scale * jax.random.normal(kk, shape, dtype=jnp.float32)

    x = jax.random.normal(keys[0], (N, C, H, W), dtype=jnp.float32)
    # Conv2d weights expressed as (tap, Cin, Cout) for the separable convs
    # and (Cin, Cout) for the 1x1 conv.
    params = {
        "c1a_w": mk(keys[1], (k, C, C)), "c1a_b": mk(keys[2], (C,)),   # (1,k)
        "c1b_w": mk(keys[3], (k, C, C)), "c1b_b": mk(keys[4], (C,)),   # (k,1)
        "c2a_w": mk(keys[5], (k, C, C)), "c2a_b": mk(keys[6], (C,)),   # (k,1)
        "c2b_w": mk(keys[7], (k, C, C)), "c2b_b": mk(keys[8], (C,)),   # (1,k)
        "c3_w":  mk(keys[9], (C, C)),    "c3_b":  mk(keys[10], (C,)),  # 1x1
    }

    out = jax.block_until_ready(jax.jit(gcn_forward)(x, params))
    ref = jax.block_until_ready(gcn_reference(x, params))

    assert out.shape == x.shape and out.dtype == x.dtype
    max_err = float(jnp.max(jnp.abs(out - ref)))
    assert jnp.allclose(out, ref, atol=1e-4, rtol=1e-4), max_err
    print("KERNEL_OK")
</pallas_src>

<mosaic_0001>
module attributes {stable_mosaic.version = 11 : i64} {
  func.func @_gcn_kernel(%arg0: i32, %arg1: memref<1x8x896xf32, #tpu.memory_space<vmem>>, %arg2: memref<8x56xf32, #tpu.memory_space<vmem>>, %arg3: memref<8x1xf32, #tpu.memory_space<vmem>>, %arg4: memref<8x56xf32, #tpu.memory_space<vmem>>, %arg5: memref<8x1xf32, #tpu.memory_space<vmem>>, %arg6: memref<8x56xf32, #tpu.memory_space<vmem>>, %arg7: memref<8x1xf32, #tpu.memory_space<vmem>>, %arg8: memref<8x56xf32, #tpu.memory_space<vmem>>, %arg9: memref<8x1xf32, #tpu.memory_space<vmem>>, %arg10: memref<8x8xf32, #tpu.memory_space<vmem>>, %arg11: memref<8x1xf32, #tpu.memory_space<vmem>>, %arg12: memref<1x8x512xf32, #tpu.memory_space<vmem>>) attributes {dimension_semantics = [#tpu.dimension_semantics<parallel>], iteration_bounds = array<i64: 2>, scalar_prefetch = 0 : i64, scratch_operands = 0 : i64, tpu.core_type = #tpu.core_type<tc>, window_params = [{transform_indices = @transform_0, window_bounds = array<i64: 1, 8, 896>}, {pipeline_mode = #tpu.pipeline_mode<synchronous>, transform_indices = @transform_1, window_bounds = array<i64: 8, 56>}, {pipeline_mode = #tpu.pipeline_mode<synchronous>, transform_indices = @transform_2, window_bounds = array<i64: 8, 1>}, {pipeline_mode = #tpu.pipeline_mode<synchronous>, transform_indices = @transform_3, window_bounds = array<i64: 8, 56>}, {pipeline_mode = #tpu.pipeline_mode<synchronous>, transform_indices = @transform_4, window_bounds = array<i64: 8, 1>}, {pipeline_mode = #tpu.pipeline_mode<synchronous>, transform_indices = @transform_5, window_bounds = array<i64: 8, 56>}, {pipeline_mode = #tpu.pipeline_mode<synchronous>, transform_indices = @transform_6, window_bounds = array<i64: 8, 1>}, {pipeline_mode = #tpu.pipeline_mode<synchronous>, transform_indices = @transform_7, window_bounds = array<i64: 8, 56>}, {pipeline_mode = #tpu.pipeline_mode<synchronous>, transform_indices = @transform_8, window_bounds = array<i64: 8, 1>}, {pipeline_mode = #tpu.pipeline_mode<synchronous>, transform_indices = @transform_9, window_bounds = array<i64: 8, 8>}, {pipeline_mode = #tpu.pipeline_mode<synchronous>, transform_indices = @transform_10, window_bounds = array<i64: 8, 1>}, {transform_indices = @transform_11, window_bounds = array<i64: 1, 8, 512>}]} {
    %0 = tpu.iota {dimensions = array<i32: 1>} : vector<1x644xi32>
    %c132_i32 = arith.constant 132 : i32
    %1 = vector.broadcast %c132_i32 : i32 to vector<1x644xi32>
    %2 = arith.cmpi sge, %0, %1 : vector<1x644xi32>
    %c484_i32 = arith.constant 484 : i32
    %3 = vector.broadcast %c484_i32 : i32 to vector<1x644xi32>
    %4 = arith.cmpi slt, %0, %3 : vector<1x644xi32>
    %5 = arith.andi %2, %4 : vector<1x644xi1>
    %6 = arith.extui %5 : vector<1x644xi1> to vector<1x644xi32>
    %7 = arith.sitofp %6 : vector<1x644xi32> to vector<1x644xf32>
    %8 = arith.sitofp %0 : vector<1x644xi32> to vector<1x644xf32>
    %cst = arith.constant 0.0454545468 : f32
    %9 = vector.broadcast %cst : f32 to vector<1x644xf32>
    %10 = arith.mulf %8, %9 : vector<1x644xf32>
    %11 = math.floor %10 : vector<1x644xf32>
    %12 = arith.fptosi %11 : vector<1x644xf32> to vector<1x644xi32>
    %c22_i32 = arith.constant 22 : i32
    %13 = vector.broadcast %c22_i32 : i32 to vector<1x644xi32>
    %14 = arith.muli %12, %13 : vector<1x644xi32>
    %15 = arith.subi %0, %14 : vector<1x644xi32>
    %c3_i32 = arith.constant 3 : i32
    %16 = vector.broadcast %c3_i32 : i32 to vector<1x644xi32>
    %17 = arith.cmpi sge, %15, %16 : vector<1x644xi32>
    %c19_i32 = arith.constant 19 : i32
    %18 = vector.broadcast %c19_i32 : i32 to vector<1x644xi32>
    %19 = arith.cmpi slt, %15, %18 : vector<1x644xi32>
    %20 = arith.andi %17, %19 : vector<1x644xi1>
    %21 = arith.extui %20 : vector<1x644xi1> to vector<1x644xi32>
    %22 = arith.sitofp %21 : vector<1x644xi32> to vector<1x644xf32>
    %c0 = arith.constant 0 : index
    %c0_0 = arith.constant 0 : index
    %c63 = arith.constant 63 : index
    %23 = vector.load %arg1[%c0, %c0_0, %c63] : memref<1x8x896xf32, #tpu.memory_space<vmem>>, vector<1x8x644xf32>
    %24 = vector.shape_cast %23 : vector<1x8x644xf32> to vector<8x644xf32>
    %c0_1 = arith.constant 0 : index
    %c0_2 = arith.constant 0 : index
    %c64 = arith.constant 64 : index
    %25 = vector.load %arg1[%c0_1, %c0_2, %c64] : memref<1x8x896xf32, #tpu.memory_space<vmem>>, vector<1x8x644xf32>
    %26 = vector.shape_cast %25 : vector<1x8x644xf32> to vector<8x644xf32>
    %c0_3 = arith.constant 0 : index
    %c0_4 = arith.constant 0 : index
    %c65 = arith.constant 65 : index
    %27 = vector.load %arg1[%c0_3, %c0_4, %c65] : memref<1x8x896xf32, #tpu.memory_space<vmem>>, vector<1x8x644xf32>
    %28 = vector.shape_cast %27 : vector<1x8x644xf32> to vector<8x644xf32>
    %c0_5 = arith.constant 0 : index
    %c0_6 = arith.constant 0 : index
    %c66 = arith.constant 66 : index
    %29 = vector.load %arg1[%c0_5, %c0_6, %c66] : memref<1x8x896xf32, #tpu.memory_space<vmem>>, vector<1x8x644xf32>
    %30 = vector.shape_cast %29 : vector<1x8x644xf32> to vector<8x644xf32>
    %c0_7 = arith.constant 0 : index
    %c0_8 = arith.constant 0 : index
    %c67 = arith.constant 67 : index
    %31 = vector.load %arg1[%c0_7, %c0_8, %c67] : memref<1x8x896xf32, #tpu.memory_space<vmem>>, vector<1x8x644xf32>
    %32 = vector.shape_cast %31 : vector<1x8x644xf32> to vector<8x644xf32>
    %c0_9 = arith.constant 0 : index
    %c0_10 = arith.constant 0 : index
    %c68 = arith.constant 68 : index
    %33 = vector.load %arg1[%c0_9, %c0_10, %c68] : memref<1x8x896xf32, #tpu.memory_space<vmem>>, vector<1x8x644xf32>
    %34 = vector.shape_cast %33 : vector<1x8x644xf32> to vector<8x644xf32>
    %c0_11 = arith.constant 0 : index
    %c0_12 = arith.constant 0 : index
    %c69 = arith.constant 69 : index
    %35 = vector.load %arg1[%c0_11, %c0_12, %c69] : memref<1x8x896xf32, #tpu.memory_space<vmem>>, vector<1x8x644xf32>
    %36 = vector.shape_cast %35 : vector<1x8x644xf32> to vector<8x644xf32>
    %37 = tpu.concatenate %24, %26, %28, %30, %32, %34, %36 in 0 : vector<8x644xf32>, vector<8x644xf32>, vector<8x644xf32>, vector<8x644xf32>, vector<8x644xf32>, vector<8x644xf32>, vector<8x644xf32> -> vector<56x644xf32>
    %c0_13 = arith.constant 0 : index
    %c0_14 = arith.constant 0 : index
    %38 = vector.load %arg2[%c0_13, %c0_14] : memref<8x56xf32, #tpu.memory_space<vmem>>, vector<8x56xf32>
    %cst_15 = arith.constant dense<0.000000e+00> : vector<8x644xf32>
    %39 = tpu.matmul %38, %37, %cst_15 {dimension_numbers = #tpu.dot_dimension_numbers<[1], [0], [0], [1], [0, 0, 1, 1], [], []>} : vector<8x56xf32>, vector<56x644xf32>, vector<8x644xf32> -> vector<8x644xf32>
    %c0_16 = arith.constant 0 : index
    %c0_17 = arith.constant 0 : index
    %40 = vector.load %arg3[%c0_16, %c0_17] : memref<8x1xf32, #tpu.memory_space<vmem>>, vector<8x1xf32>
    %41 = vector.broadcast %40 : vector<8x1xf32> to vector<8x644xf32>
    %42 = arith.addf %39, %41 : vector<8x644xf32>
    %cst_18 = arith.constant 0.000000e+00 : f32
    %43 = vector.broadcast %cst_18 : f32 to vector<8x644xf32>
    %44 = arith.maximumf %42, %43 : vector<8x644xf32>
    %45 = vector.broadcast %7 : vector<1x644xf32> to vector<8x644xf32>
    %46 = arith.mulf %44, %45 : vector<8x644xf32>
    %47 = vector.extract_strided_slice %46 {offsets = [0, 0], sizes = [8, 512], strides = [1, 1]} : vector<8x644xf32> to vector<8x512xf32>
    %48 = vector.extract_strided_slice %46 {offsets = [0, 22], sizes = [8, 512], strides = [1, 1]} : vector<8x644xf32> to vector<8x512xf32>
    %49 = vector.extract_strided_slice %46 {offsets = [0, 44], sizes = [8, 512], strides = [1, 1]} : vector<8x644xf32> to vector<8x512xf32>
    %50 = vector.extract_strided_slice %46 {offsets = [0, 66], sizes = [8, 512], strides = [1, 1]} : vector<8x644xf32> to vector<8x512xf32>
    %51 = vector.extract_strided_slice %46 {offsets = [0, 88], sizes = [8, 512], strides = [1, 1]} : vector<8x644xf32> to vector<8x512xf32>
    %52 = vector.extract_strided_slice %46 {offsets = [0, 110], sizes = [8, 512], strides = [1, 1]} : vector<8x644xf32> to vector<8x512xf32>
    %53 = vector.extract_strided_slice %46 {offsets = [0, 132], sizes = [8, 512], strides = [1, 1]} : vector<8x644xf32> to vector<8x512xf32>
    %54 = tpu.concatenate %47, %48, %49, %50, %51, %52, %53 in 0 : vector<8x512xf32>, vector<8x512xf32>, vector<8x512xf32>, vector<8x512xf32>, vector<8x512xf32>, vector<8x512xf32>, vector<8x512xf32> -> vector<56x512xf32>
    %c0_19 = arith.constant 0 : index
    %c0_20 = arith.constant 0 : index
    %55 = vector.load %arg4[%c0_19, %c0_20] : memref<8x56xf32, #tpu.memory_space<vmem>>, vector<8x56xf32>
    %cst_21 = arith.constant dense<0.000000e+00> : vector<8x512xf32>
    %56 = tpu.matmul %55, %54, %cst_21 {dimension_numbers = #tpu.dot_dimension_numbers<[1], [0], [0], [1], [0, 0, 1, 1], [], []>} : vector<8x56xf32>, vector<56x512xf32>, vector<8x512xf32> -> vector<8x512xf32>
    %c0_22 = arith.constant 0 : index
    %c0_23 = arith.constant 0 : index
    %57 = vector.load %arg5[%c0_22, %c0_23] : memref<8x1xf32, #tpu.memory_space<vmem>>, vector<8x1xf32>
    %58 = vector.broadcast %57 : vector<8x1xf32> to vector<8x512xf32>
    %59 = arith.addf %56, %58 : vector<8x512xf32>
    %cst_24 = arith.constant 0.000000e+00 : f32
    %60 = vector.broadcast %cst_24 : f32 to vector<8x512xf32>
    %61 = arith.maximumf %59, %60 : vector<8x512xf32>
    %c0_25 = arith.constant 0 : index
    %c0_26 = arith.constant 0 : index
    %c0_27 = arith.constant 0 : index
    %62 = vector.load %arg1[%c0_25, %c0_26, %c0_27] : memref<1x8x896xf32, #tpu.memory_space<vmem>>, vector<1x8x644xf32>
    %63 = vector.shape_cast %62 : vector<1x8x644xf32> to vector<8x644xf32>
    %c0_28 = arith.constant 0 : index
    %c0_29 = arith.constant 0 : index
    %c22 = arith.constant 22 : index
    %64 = vector.load %arg1[%c0_28, %c0_29, %c22] : memref<1x8x896xf32, #tpu.memory_space<vmem>>, vector<1x8x644xf32>
    %65 = vector.shape_cast %64 : vector<1x8x644xf32> to vector<8x644xf32>
    %c0_30 = arith.constant 0 : index
    %c0_31 = arith.constant 0 : index
    %c44 = arith.constant 44 : index
    %66 = vector.load %arg1[%c0_30, %c0_31, %c44] : memref<1x8x896xf32, #tpu.memory_space<vmem>>, vector<1x8x644xf32>
    %67 = vector.shape_cast %66 : vector<1x8x644xf32> to vector<8x644xf32>
    %c0_32 = arith.constant 0 : index
    %c0_33 = arith.constant 0 : index
    %c66_34 = arith.constant 66 : index
    %68 = vector.load %arg1[%c0_32, %c0_33, %c66_34] : memref<1x8x896xf32, #tpu.memory_space<vmem>>, vector<1x8x644xf32>
    %69 = vector.shape_cast %68 : vector<1x8x644xf32> to vector<8x644xf32>
    %c0_35 = arith.constant 0 : index
    %c0_36 = arith.constant 0 : index
    %c88 = arith.constant 88 : index
    %70 = vector.load %arg1[%c0_35, %c0_36, %c88] : memref<1x8x896xf32, #tpu.memory_space<vmem>>, vector<1x8x644xf32>
    %71 = vector.shape_cast %70 : vector<1x8x644xf32> to vector<8x644xf32>
    %c0_37 = arith.constant 0 : index
    %c0_38 = arith.constant 0 : index
    %c110 = arith.constant 110 : index
    %72 = vector.load %arg1[%c0_37, %c0_38, %c110] : memref<1x8x896xf32, #tpu.memory_space<vmem>>, vector<1x8x644xf32>
    %73 = vector.shape_cast %72 : vector<1x8x644xf32> to vector<8x644xf32>
    %c0_39 = arith.constant 0 : index
    %c0_40 = arith.constant 0 : index
    %c132 = arith.constant 132 : index
    %74 = vector.load %arg1[%c0_39, %c0_40, %c132] : memref<1x8x896xf32, #tpu.memory_space<vmem>>, vector<1x8x644xf32>
    %75 = vector.shape_cast %74 : vector<1x8x644xf32> to vector<8x644xf32>
    %76 = tpu.concatenate %63, %65, %67, %69, %71, %73, %75 in 0 : vector<8x644xf32>, vector<8x644xf32>, vector<8x644xf32>, vector<8x644xf32>, vector<8x644xf32>, vector<8x644xf32>, vector<8x644xf32> -> vector<56x644xf32>
    %c0_41 = arith.constant 0 : index
    %c0_42 = arith.constant 0 : index
    %77 = vector.load %arg6[%c0_41, %c0_42] : memref<8x56xf32, #tpu.memory_space<vmem>>, vector<8x56xf32>
    %cst_43 = arith.constant dense<0.000000e+00> : vector<8x644xf32>
    %78 = tpu.matmul %77, %76, %cst_43 {dimension_numbers = #tpu.dot_dimension_numbers<[1], [0], [0], [1], [0, 0, 1, 1], [], []>} : vector<8x56xf32>, vector<56x644xf32>, vector<8x644xf32> -> vector<8x644xf32>
    %c0_44 = arith.constant 0 : index
    %c0_45 = arith.constant 0 : index
    %79 = vector.load %arg7[%c0_44, %c0_45] : memref<8x1xf32, #tpu.memory_space<vmem>>, vector<8x1xf32>
    %80 = vector.broadcast %79 : vector<8x1xf32> to vector<8x644xf32>
    %81 = arith.addf %78, %80 : vector<8x644xf32>
    %cst_46 = arith.constant 0.000000e+00 : f32
    %82 = vector.broadcast %cst_46 : f32 to vector<8x644xf32>
    %83 = arith.maximumf %81, %82 : vector<8x644xf32>
    %84 = vector.broadcast %22 : vector<1x644xf32> to vector<8x644xf32>
    %85 = arith.mulf %83, %84 : vector<8x644xf32>
    %86 = vector.extract_strided_slice %85 {offsets = [0, 63], sizes = [8, 512], strides = [1, 1]} : vector<8x644xf32> to vector<8x512xf32>
    %87 = vector.extract_strided_slice %85 {offsets = [0, 64], sizes = [8, 512], strides = [1, 1]} : vector<8x644xf32> to vector<8x512xf32>
    %88 = vector.extract_strided_slice %85 {offsets = [0, 65], sizes = [8, 512], strides = [1, 1]} : vector<8x644xf32> to vector<8x512xf32>
    %89 = vector.extract_strided_slice %85 {offsets = [0, 66], sizes = [8, 512], strides = [1, 1]} : vector<8x644xf32> to vector<8x512xf32>
    %90 = vector.extract_strided_slice %85 {offsets = [0, 67], sizes = [8, 512], strides = [1, 1]} : vector<8x644xf32> to vector<8x512xf32>
    %91 = vector.extract_strided_slice %85 {offsets = [0, 68], sizes = [8, 512], strides = [1, 1]} : vector<8x644xf32> to vector<8x512xf32>
    %92 = vector.extract_strided_slice %85 {offsets = [0, 69], sizes = [8, 512], strides = [1, 1]} : vector<8x644xf32> to vector<8x512xf32>
    %93 = tpu.concatenate %86, %87, %88, %89, %90, %91, %92 in 0 : vector<8x512xf32>, vector<8x512xf32>, vector<8x512xf32>, vector<8x512xf32>, vector<8x512xf32>, vector<8x512xf32>, vector<8x512xf32> -> vector<56x512xf32>
    %c0_47 = arith.constant 0 : index
    %c0_48 = arith.constant 0 : index
    %94 = vector.load %arg8[%c0_47, %c0_48] : memref<8x56xf32, #tpu.memory_space<vmem>>, vector<8x56xf32>
    %cst_49 = arith.constant dense<0.000000e+00> : vector<8x512xf32>
    %95 = tpu.matmul %94, %93, %cst_49 {dimension_numbers = #tpu.dot_dimension_numbers<[1], [0], [0], [1], [0, 0, 1, 1], [], []>} : vector<8x56xf32>, vector<56x512xf32>, vector<8x512xf32> -> vector<8x512xf32>
    %c0_50 = arith.constant 0 : index
    %c0_51 = arith.constant 0 : index
    %96 = vector.load %arg9[%c0_50, %c0_51] : memref<8x1xf32, #tpu.memory_space<vmem>>, vector<8x1xf32>
    %97 = vector.broadcast %96 : vector<8x1xf32> to vector<8x512xf32>
    %98 = arith.addf %95, %97 : vector<8x512xf32>
    %cst_52 = arith.constant 0.000000e+00 : f32
    %99 = vector.broadcast %cst_52 : f32 to vector<8x512xf32>
    %100 = arith.maximumf %98, %99 : vector<8x512xf32>
    %c0_53 = arith.constant 0 : index
    %c0_54 = arith.constant 0 : index
    %101 = vector.load %arg10[%c0_53, %c0_54] : memref<8x8xf32, #tpu.memory_space<vmem>>, vector<8x8xf32>
    %102 = arith.addf %61, %100 : vector<8x512xf32>
    %cst_55 = arith.constant dense<0.000000e+00> : vector<8x512xf32>
    %103 = tpu.matmul %101, %102, %cst_55 {dimension_numbers = #tpu.dot_dimension_numbers<[1], [0], [0], [1], [0, 0, 1, 1], [], []>} : vector<8x8xf32>, vector<8x512xf32>, vector<8x512xf32> -> vector<8x512xf32>
    %c0_56 = arith.constant 0 : index
    %c0_57 = arith.constant 0 : index
    %c132_58 = arith.constant 132 : index
    %104 = vector.load %arg1[%c0_56, %c0_57, %c132_58] : memref<1x8x896xf32, #tpu.memory_space<vmem>>, vector<1x8x512xf32>
    %105 = vector.shape_cast %104 : vector<1x8x512xf32> to vector<8x512xf32>
    %106 = arith.addf %105, %103 : vector<8x512xf32>
    %c0_59 = arith.constant 0 : index
    %c0_60 = arith.constant 0 : index
    %107 = vector.load %arg11[%c0_59, %c0_60] : memref<8x1xf32, #tpu.memory_space<vmem>>, vector<8x1xf32>
    %108 = vector.broadcast %107 : vector<8x1xf32> to vector<8x512xf32>
    %109 = arith.addf %106, %108 : vector<8x512xf32>
    %c0_61 = arith.constant 0 : index
    %c0_62 = arith.constant 0 : index
    %c0_63 = arith.constant 0 : index
    %110 = vector.load %arg12[%c0_61, %c0_62, %c0_63] : memref<1x8x512xf32, #tpu.memory_space<vmem>>, vector<1x8x512xf32>
    %111 = vector.shape_cast %110 : vector<1x8x512xf32> to vector<8x512xf32>
    %112 = vector.shape_cast %109 : vector<8x512xf32> to vector<1x8x512xf32>
    tpu.vector_store %arg12[%c0_61, %c0_62, %c0_63], %112 {strides = array<i32>} : memref<1x8x512xf32, #tpu.memory_space<vmem>>, vector<1x8x512xf32>,
    return
  }
  func.func @transform_0(%arg0: i32) -> (i32, i32, i32) {
    %c0_i32 = arith.constant 0 : i32
    %c0_i32_0 = arith.constant 0 : i32
    %c0_i32_1 = arith.constant 0 : i32
    return %arg0, %c0_i32, %c0_i32_0 : i32, i32, i32
  }
  func.func @transform_1(%arg0: i32) -> (i32, i32) {
    %c0_i32 = arith.constant 0 : i32
    %c0_i32_0 = arith.constant 0 : i32
    %c0_i32_1 = arith.constant 0 : i32
    return %c0_i32, %c0_i32_0 : i32, i32
  }
  func.func @transform_2(%arg0: i32) -> (i32, i32) {
    %c0_i32 = arith.constant 0 : i32
    %c0_i32_0 = arith.constant 0 : i32
    %c0_i32_1 = arith.constant 0 : i32
    return %c0_i32, %c0_i32_0 : i32, i32
  }
  func.func @transform_3(%arg0: i32) -> (i32, i32) {
    %c0_i32 = arith.constant 0 : i32
    %c0_i32_0 = arith.constant 0 : i32
    %c0_i32_1 = arith.constant 0 : i32
    return %c0_i32, %c0_i32_0 : i32, i32
  }
  func.func @transform_4(%arg0: i32) -> (i32, i32) {
    %c0_i32 = arith.constant 0 : i32
    %c0_i32_0 = arith.constant 0 : i32
    %c0_i32_1 = arith.constant 0 : i32
    return %c0_i32, %c0_i32_0 : i32, i32
  }
  func.func @transform_5(%arg0: i32) -> (i32, i32) {
    %c0_i32 = arith.constant 0 : i32
    %c0_i32_0 = arith.constant 0 : i32
    %c0_i32_1 = arith.constant 0 : i32
    return %c0_i32, %c0_i32_0 : i32, i32
  }
  func.func @transform_6(%arg0: i32) -> (i32, i32) {
    %c0_i32 = arith.constant 0 : i32
    %c0_i32_0 = arith.constant 0 : i32
    %c0_i32_1 = arith.constant 0 : i32
    return %c0_i32, %c0_i32_0 : i32, i32
  }
  func.func @transform_7(%arg0: i32) -> (i32, i32) {
    %c0_i32 = arith.constant 0 : i32
    %c0_i32_0 = arith.constant 0 : i32
    %c0_i32_1 = arith.constant 0 : i32
    return %c0_i32, %c0_i32_0 : i32, i32
  }
  func.func @transform_8(%arg0: i32) -> (i32, i32) {
    %c0_i32 = arith.constant 0 : i32
    %c0_i32_0 = arith.constant 0 : i32
    %c0_i32_1 = arith.constant 0 : i32
    return %c0_i32, %c0_i32_0 : i32, i32
  }
  func.func @transform_9(%arg0: i32) -> (i32, i32) {
    %c0_i32 = arith.constant 0 : i32
    %c0_i32_0 = arith.constant 0 : i32
    %c0_i32_1 = arith.constant 0 : i32
    return %c0_i32, %c0_i32_0 : i32, i32
  }
  func.func @transform_10(%arg0: i32) -> (i32, i32) {
    %c0_i32 = arith.constant 0 : i32
    %c0_i32_0 = arith.constant 0 : i32
    %c0_i32_1 = arith.constant 0 : i32
    return %c0_i32, %c0_i32_0 : i32, i32
  }
  func.func @transform_11(%arg0: i32) -> (i32, i32, i32) {
    %c0_i32 = arith.constant 0 : i32
    %c0_i32_0 = arith.constant 0 : i32
    %c0_i32_1 = arith.constant 0 : i32
    return %arg0, %c0_i32, %c0_i32_0 : i32, i32, i32
  }
}

</mosaic_0001>

<bundles_post_ra>
// kernel: gcn_forward.1
= control target key start
LH: loop header
LB: loop body
LE: loop exit
PB: predicated region body
PF: predicated region fallthrough
CT: control target
= control target key end

     0   :  { %s2449_s17 = smov 0   ;;  %s3301_s0 = inlined_call_operand.vmem [shape: f32[2,8,896], index: 0, kind: input, shape index: {}]   ;;  %s3302_s1 = inlined_call_operand.vmem [shape: f32[8,56], index: 1, kind: input, shape index: {}]   ;;  %s3303_s2 = inlined_call_operand.vmem [shape: f32[8,1], index: 2, kind: input, shape index: {}]   ;;  %s3304_s3 = inlined_call_operand.vmem [shape: f32[8,56], index: 3, kind: input, shape index: {}]   ;;  %s3305_s4 = inlined_call_operand.vmem [shape: f32[8,1], index: 4, kind: input, shape index: {}]   ;;  %s3306_s5 = inlined_call_operand.vmem [shape: f32[8,56], index: 5, kind: input, shape index: {}]   ;;  %s3307_s6 = inlined_call_operand.vmem [shape: f32[8,1], index: 6, kind: input, shape index: {}]   ;;  %s3308_s7 = inlined_call_operand.vmem [shape: f32[8,56], index: 7, kind: input, shape index: {}]   ;;  %s3309_s8 = inlined_call_operand.vmem [shape: f32[8,1], index: 8, kind: input, shape index: {}]   ;;  %s3310_s9 = inlined_call_operand.vmem [shape: f32[8,8], index: 9, kind: input, shape index: {}]   ;;  %s3311_s10 = inlined_call_operand.vmem [shape: f32[8,1], index: 10, kind: input, shape index: {}]   ;;  %s3312_s11 = inlined_call_operand.vmem [shape: f32[2,8,512], index: 11, kind: output, shape index: {}]  }
   0x1 LB: > { %s2295_s18 = sadd.s32 4294967295, %s2372_s17   ;;  %p2299_p0 = scmp.ge.s32.totalorder %s2372_s17, 1  ;;  %s2372_s17 = sphi %s2449_s17, %s21_s17  }
   0x2   : > { %p337_p1 = scmp.lt.s32.totalorder %s2372_s17, 3 }
   0x4   : > { %p338_p2 = pnand %p2299_p0, %p337_p1 }
   0x5   : > { %p377_p3 = scmp.lt.s32.totalorder (!%p338_p2), %s2295_s18, 1  ;;  %s2374_s23 = smov (!%p338_p2), 122  }
   0x6   : > { %341 = sbr.rel (%p338_p2) target bundleno = 1863 (0x747), region = 64  ;;  %s2375_s24 = smov (!%p338_p2), 123  }
   0x7   : > { %s2376_s25 = smov (!%p338_p2), 124   ;;  %s2377_s26 = smov (!%p338_p2), 125  }
   0x8   : > { %s2378_s27 = smov (!%p338_p2), 126   ;;  %s2379_s28 = smov (!%p338_p2), 127  }
   0x9   : > { %s2380_s29 = smov (!%p338_p2), 65   ;;  %s2383_s13 = smov (!%p338_p2), 18  }
   0xa   : > { %s2384_s14 = smov (!%p338_p2), 40   ;;  %s2385_s15 = smov (!%p338_p2), 62  }
   0xb   : > { %s3314_s18 = smov (!%p377_p3, %s2295_s18), 1  ;;  %vm593_vm0 = vcmask 998400   ;;  %vm575_vm1 = vcmask 1006592   ;;  %vm557_vm2 = vcmask 1014784   ;;  %vm539_vm3 = vcmask 1022976   ;;  %s2386_s16 = smov 84  }
   0xc   : > { %s2325_s19 = smul.u32 56, %s3314_s18  ;;  %vm521_vm4 = vcmask 1031168   ;;  %vm503_vm5 = vcmask 1039360   ;;  %vm690_vm6 = vcmask 531456   ;;  %vm768_vm7 = vcmask 457728   ;;  %s2388_s30 = smov 4  }
   0xd   : > { %vm1088_vm10 = vcmask 146432   ;;  %vm1069_vm11 = vcmask 326656   ;;  %vm1050_vm12 = vcmask 506880   ;;  %vm1031_vm13 = vcmask 687104   ;;  %s2324_s12 = sshll.u32 %s3314_s18, 5 }
   0xe   : > { %s2463_s22 = scalar_lea.vmem %s3301_s0, %s2325_s19  ;;  %s2387_s19 = smov 106   ;;  %vm1012_vm14 = vcmask 867328  }
   0xf   : > { %v2466_v0 = vld [vmem:[%s2463_s22 + $0x18] sm:$0xff]  ;;  %v2469_v1 = vld [vmem:[%s2463_s22 + $0x8] sm:$0xff]  ;;  %v2476_v2 = vld [vmem:[%s2463_s22 + $0x10] sm:$0xff] }
  0x10   : > { %587 = vrot.lane.b32.xlu1 %v2466_v0, %s2374_s23  ;;  %583 = vrot.lane.b32.xlu0 %v2469_v1, %s2374_s23  ;;  %v2479_v3 = vld [vmem:[%s2463_s22] sm:$0xff]  ;;  %v2497_v5 = vld [vmem:[%s2463_s22 + $0x28] sm:$0xff] }
  0x11   : > { %v2490_v4 = vld [vmem:[%s2463_s22 + $0x20] sm:$0xff] }
  0x14   : > { %585 = vrot.lane.b32.xlu0 %v2476_v2, %s2374_s23  ;;  %581 = vrot.lane.b32.xlu1 %v2479_v3, %s2374_s23 }
  0x18   : > { %565 = vrot.lane.b32.xlu0 %v2469_v1, %s2375_s24  ;;  %567 = vrot.lane.b32.xlu1 %v2476_v2, %s2375_s24 }
  0x1c   : > { %569 = vrot.lane.b32.xlu0 %v2466_v0, %s2375_s24  ;;  %589 = vrot.lane.b32.xlu1 %v2490_v4, %s2374_s23 }
  0x20   : > { %591 = vrot.lane.b32.xlu0 %v2497_v5, %s2374_s23  ;;  %563 = vrot.lane.b32.xlu1 %v2479_v3, %s2375_s24 }
  0x24   : > { %547 = vrot.lane.b32.xlu0 %v2469_v1, %s2376_s25  ;;  %549 = vrot.lane.b32.xlu1 %v2476_v2, %s2376_s25 }
  0x28   : > { %551 = vrot.lane.b32.xlu0 %v2466_v0, %s2376_s25  ;;  %571 = vrot.lane.b32.xlu1 %v2490_v4, %s2375_s24 }
  0x2c   : > { %573 = vrot.lane.b32.xlu0 %v2497_v5, %s2375_s24  ;;  %545 = vrot.lane.b32.xlu1 %v2479_v3, %s2376_s25 }
  0x30   : > { %529 = vrot.lane.b32.xlu0 %v2469_v1, %s2377_s26  ;;  %531 = vrot.lane.b32.xlu1 %v2476_v2, %s2377_s26 }
  0x34   : > { %533 = vrot.lane.b32.xlu0 %v2466_v0, %s2377_s26  ;;  %553 = vrot.lane.b32.xlu1 %v2490_v4, %s2376_s25 }
  0x38   : > { %555 = vrot.lane.b32.xlu0 %v2497_v5, %s2376_s25  ;;  %527 = vrot.lane.b32.xlu1 %v2479_v3, %s2377_s26 }
  0x3c   : > { %511 = vrot.lane.b32.xlu0 %v2469_v1, %s2378_s27  ;;  %513 = vrot.lane.b32.xlu1 %v2476_v2, %s2378_s27 }
  0x40   : > { %515 = vrot.lane.b32.xlu0 %v2466_v0, %s2378_s27  ;;  %535 = vrot.lane.b32.xlu1 %v2490_v4, %s2377_s26 }
  0x44   : > { %537 = vrot.lane.b32.xlu0 %v2497_v5, %s2377_s26  ;;  %509 = vrot.lane.b32.xlu1 %v2479_v3, %s2378_s27 }
  0x48   : > { %493 = vrot.lane.b32.xlu0 %v2469_v1, %s2379_s28  ;;  %495 = vrot.lane.b32.xlu1 %v2476_v2, %s2379_s28 }
  0x4c   : > { %497 = vrot.lane.b32.xlu0 %v2466_v0, %s2379_s28  ;;  %517 = vrot.lane.b32.xlu1 %v2490_v4, %s2378_s27 }
  0x50   : > { %519 = vrot.lane.b32.xlu0 %v2497_v5, %s2378_s27  ;;  %491 = vrot.lane.b32.xlu1 %v2479_v3, %s2379_s28 }
  0x54   : > { %499 = vrot.lane.b32.xlu0 %v2490_v4, %s2379_s28  ;;  %501 = vrot.lane.b32.xlu1 %v2497_v5, %s2379_s28 }
  0x82   : > { %v588_v6 = vpop.permute.xlu1 %587  ;;  %v584_v7 = vpop.permute.xlu0 %583 }
  0x86   : > { %v586_v8 = vpop.permute.xlu0 %585  ;;  %v582_v9 = vpop.permute.xlu1 %581 }
  0x87   : > { %v595_v10 = vsel %vm593_vm0, %v584_v7, %v586_v8  ;;  %v596_v11 = vsel %vm593_vm0, %v586_v8, %v588_v6  ;;  %v594_v14 = vsel %vm593_vm0, %v582_v9, %v584_v7 }
  0x88   : > { %680 = vrot.lane.b32.xlu0 %v595_v10, %s2380_s29  ;;  %682 = vrot.lane.b32.xlu1 %v596_v11, %s2380_s29  ;;  %v2381_v11 = vmov 0.0  }
  0x89   : > { %836 = vmatprep.mubr.f32.mxu0 %v2381_v11  ;;  %907 = vmatprep.mubr.f32.mxu1 %v2381_v11 }
  0x8a   : > { %v566_v12 = vpop.permute.xlu0 %565  ;;  %v568_v13 = vpop.permute.xlu1 %567 }
  0x8b   : > { %v577_v15 = vsel %vm575_vm1, %v566_v12, %v568_v13 }
  0x8c   : > { %678 = vrot.lane.b32.xlu0 %v594_v14, %s2380_s29  ;;  %668 = vrot.lane.b32.xlu1 %v577_v15, %s2380_s29  ;;  %v2382_v15 = vmov 0  }
  0x8d   : > { %2359 = vset.pattern.permute.xlu0 %v2382_v15  ;;  %2360 = vset.pattern.permute.xlu1 %v2382_v15 }
  0x8e   : > { %v570_v16 = vpop.permute.xlu0 %569  ;;  %v590_v17 = vpop.permute.xlu1 %589 }
  0x8f   : > { %v578_v18 = vsel %vm575_vm1, %v568_v13, %v570_v16  ;;  %v597_v19 = vsel %vm593_vm0, %v588_v6, %v590_v17 }
  0x90   : > { %670 = vrot.lane.b32.xlu0 %v578_v18, %s2380_s29  ;;  %684 = vrot.lane.b32.xlu1 %v597_v19, %s2380_s29 }
  0x92   : > { %v2567_v20 = vpop.permute.xlu0 %591  ;;  %v564_v21 = vpop.permute.xlu1 %563 }
  0x93   : > { %v598_v22 = vsel %vm593_vm0, %v590_v17, %v2567_v20  ;;  %v576_v23 = vsel %vm575_vm1, %v564_v21, %v566_v12 }
  0x94   : > { %686 = vrot.lane.b32.xlu0 %v598_v22, %s2380_s29  ;;  %666 = vrot.lane.b32.xlu1 %v576_v23, %s2380_s29 }
  0x96   : > { %v548_v24 = vpop.permute.xlu0 %547  ;;  %v550_v25 = vpop.permute.xlu1 %549 }
  0x97   : > { %v559_v26 = vsel %vm557_vm2, %v548_v24, %v550_v25 }
  0x98   : > { %656 = vrot.lane.b32.xlu0 %v559_v26, %s2380_s29 }
  0x9a   : > { %v552_v27 = vpop.permute.xlu0 %551  ;;  %v572_v28 = vpop.permute.xlu1 %571 }
  0x9b   : > { %v560_v29 = vsel %vm557_vm2, %v550_v25, %v552_v27  ;;  %v579_v30 = vsel %vm575_vm1, %v570_v16, %v572_v28  ;;  %v600_v16 = vld [vmem:[%s3303_s2] sm:$0xff] }
  0x9c   : > { %658 = vrot.lane.b32.xlu1 %v560_v29, %s2380_s29  ;;  %672 = vrot.lane.b32.xlu0 %v579_v30, %s2380_s29 }
  0x9e   : > { %v2580_v31 = vpop.permute.xlu0 %573  ;;  %v546_v32 = vpop.permute.xlu1 %545 }
  0x9f   : > { %v580_v33 = vsel %vm575_vm1, %v572_v28, %v2580_v31  ;;  %v558_v34 = vsel %vm557_vm2, %v546_v32, %v548_v24 }
  0xa0   : > { %674 = vrot.lane.b32.xlu1 %v580_v33, %s2380_s29  ;;  %654 = vrot.lane.b32.xlu0 %v558_v34, %s2380_s29 }
  0xa2   : > { %v530_v35 = vpop.permute.xlu0 %529  ;;  %v532_v36 = vpop.permute.xlu1 %531 }
  0xa3   : > { %v541_v37 = vsel %vm539_vm3, %v530_v35, %v532_v36 }
  0xa4   : > { %644 = vrot.lane.b32.xlu1 %v541_v37, %s2380_s29 }
  0xa6   : > { %v534_v38 = vpop.permute.xlu0 %533  ;;  %v554_v39 = vpop.permute.xlu1 %553 }
  0xa7   : > { %v542_v40 = vsel %vm539_vm3, %v532_v36, %v534_v38  ;;  %v561_v41 = vsel %vm557_vm2, %v552_v27, %v554_v39 }
  0xa8   : > { %646 = vrot.lane.b32.xlu0 %v542_v40, %s2380_s29  ;;  %660 = vrot.lane.b32.xlu1 %v561_v41, %s2380_s29 }
  0xaa   : > { %v556_v42 = vpop.permute.xlu0 %555  ;;  %v528_v43 = vpop.permute.xlu1 %527 }
  0xab   : > { %v562_v44 = vsel %vm557_vm2, %v554_v39, %v556_v42  ;;  %v540_v45 = vsel %vm539_vm3, %v528_v43, %v530_v35  ;;  %v1277_v35 = vld [vmem:[%s2463_s22 + $0x30] sm:$0xff] }
  0xac   : > { %662 = vrot.lane.b32.xlu0 %v562_v44, %s2380_s29  ;;  %642 = vrot.lane.b32.xlu1 %v540_v45, %s2380_s29 }
  0xae   : > { %v512_v46 = vpop.permute.xlu0 %511  ;;  %v514_v47 = vpop.permute.xlu1 %513 }
  0xaf   : > { %v523_v48 = vsel %vm521_vm4, %v512_v46, %v514_v47 }
  0xb0   : > { %632 = vrot.lane.b32.xlu0 %v523_v48, %s2380_s29 }
  0xb2   : > { %v516_v49 = vpop.permute.xlu0 %515  ;;  %v536_v50 = vpop.permute.xlu1 %535 }
  0xb3   : > { %v524_v51 = vsel %vm521_vm4, %v514_v47, %v516_v49  ;;  %v543_v52 = vsel %vm539_vm3, %v534_v38, %v536_v50 }
  0xb4   : > { %634 = vrot.lane.b32.xlu1 %v524_v51, %s2380_s29  ;;  %648 = vrot.lane.b32.xlu0 %v543_v52, %s2380_s29 }
  0xb6   : > { %v538_v53 = vpop.permute.xlu0 %537  ;;  %v510_v54 = vpop.permute.xlu1 %509 }
  0xb7   : > { %v544_v55 = vsel %vm539_vm3, %v536_v50, %v538_v53  ;;  %v522_v56 = vsel %vm521_vm4, %v510_v54, %v512_v46 }
  0xb8   : > { %650 = vrot.lane.b32.xlu1 %v544_v55, %s2380_s29  ;;  %630 = vrot.lane.b32.xlu0 %v522_v56, %s2380_s29 }
  0xba   : > { %v494_v57 = vpop.permute.xlu0 %493  ;;  %v496_v58 = vpop.permute.xlu1 %495 }
  0xbb   : > { %v505_v59 = vsel %vm503_vm5, %v494_v57, %v496_v58 }
  0xbc   : > { %620 = vrot.lane.b32.xlu1 %v505_v59, %s2380_s29 }
  0xbe   : > { %v498_v60 = vpop.permute.xlu0 %497  ;;  %v518_v61 = vpop.permute.xlu1 %517 }
  0xbf   : > { %v506_v62 = vsel %vm503_vm5, %v496_v58, %v498_v60  ;;  %v525_v63 = vsel %vm521_vm4, %v516_v49, %v518_v61 }
  0xc0   : > { %622 = vrot.lane.b32.xlu0 %v506_v62, %s2380_s29  ;;  %636 = vrot.lane.b32.xlu1 %v525_v63, %s2380_s29 }
  0xc2   : > { %v520_v6 = vpop.permute.xlu0 %519  ;;  %v492_v7 = vpop.permute.xlu1 %491 }
  0xc3   : > { %v526_v8 = vsel %vm521_vm4, %v518_v61, %v520_v6  ;;  %v504_v9 = vsel %vm503_vm5, %v492_v7, %v494_v57 }
  0xc4   : > { %638 = vrot.lane.b32.xlu0 %v526_v8, %s2380_s29  ;;  %618 = vrot.lane.b32.xlu1 %v504_v9, %s2380_s29 }
  0xc6   : > { %v502_v10 = vpop.permute.xlu1 %501  ;;  %v500_v12 = vpop.permute.xlu0 %499 }
  0xc7   : > { %v508_v13 = vsel %vm503_vm5, %v500_v12, %v502_v10  ;;  %v507_v14 = vsel %vm503_vm5, %v498_v60, %v500_v12 }
  0xc8   : > { %608 = vrot.lane.b32.xlu0 %v2469_v1, %s2380_s29  ;;  %610 = vrot.lane.b32.xlu1 %v2476_v2, %s2380_s29 }
  0xcc   : > { %624 = vrot.lane.b32.xlu0 %v507_v14, %s2380_s29  ;;  %626 = vrot.lane.b32.xlu1 %v508_v13, %s2380_s29 }
  0xd0   : > { %606 = vrot.lane.b32.xlu0 %v2479_v3, %s2380_s29  ;;  %612 = vrot.lane.b32.xlu1 %v2466_v0, %s2380_s29 }
  0xd4   : > { %614 = vrot.lane.b32.xlu0 %v2490_v4, %s2380_s29  ;;  %688 = vrot.lane.b32.xlu1 %v2567_v20, %s2380_s29 }
  0xd8   : > { %676 = vrot.lane.b32.xlu0 %v2580_v31, %s2380_s29  ;;  %664 = vrot.lane.b32.xlu1 %v556_v42, %s2380_s29 }
  0xdc   : > { %652 = vrot.lane.b32.xlu0 %v538_v53, %s2380_s29  ;;  %640 = vrot.lane.b32.xlu1 %v520_v6, %s2380_s29 }
  0xe0   : > { %616 = vrot.lane.b32.xlu1 %v2497_v5, %s2380_s29  ;;  %628 = vrot.lane.b32.xlu0 %v502_v10, %s2380_s29 }
  0xe4   : > { %603 = vperm.xlu0 %2359, %v600_v16   ;;  %1403 = vrot.lane.b32.xlu1 %v2466_v0, %s2376_s25 }
  0xe8   : > { %1401 = vrot.lane.b32.xlu0 %v2476_v2, %s2376_s25  ;;  %1372 = vrot.lane.b32.xlu1 %v2469_v1, %s2383_s13 }
  0xec   : > { %1399 = vrot.lane.b32.xlu0 %v2469_v1, %s2376_s25  ;;  %1370 = vrot.lane.b32.xlu1 %v2479_v3, %s2383_s13 }
  0xf0   : > { %1374 = vrot.lane.b32.xlu0 %v2476_v2, %s2383_s13  ;;  %1351 = vrot.lane.b32.xlu1 %v2476_v2, %s2384_s14 }
  0xf4   : > { %1349 = vrot.lane.b32.xlu0 %v2469_v1, %s2384_s14  ;;  %1326 = vrot.lane.b32.xlu1 %v2469_v1, %s2385_s15 }
  0xf8   : > { %1347 = vrot.lane.b32.xlu0 %v2479_v3, %s2384_s14  ;;  %1324 = vrot.lane.b32.xlu1 %v2479_v3, %s2385_s15 }
  0xfa   : > { %v681_v17 = vpop.permute.xlu0 %680  ;;  %v683_v18 = vpop.permute.xlu1 %682 }
  0xfb   : > { %v722_v19 = vsel %vm690_vm6, %v681_v17, %v683_v18 }
  0xfc   : > { %790 = vmatprep.subr.mxu0 %v722_v19  ;;  %1328 = vrot.lane.b32.xlu0 %v2476_v2, %s2385_s15 }
  0xfd   : > { %1305 = vrot.lane.b32.xlu1 %v2476_v2, %s2386_s16 }
  0xfe   : > { %v679_v20 = vpop.permute.xlu0 %678  ;;  %v669_v21 = vpop.permute.xlu1 %668 }
  0xff   : > { %v721_v22 = vsel %vm690_vm6, %v679_v20, %v681_v17 }
 0x100   : > { %791 = vmatpush1.msra.mxu0 %v721_v22  ;;  %1303 = vrot.lane.b32.xlu0 %v2469_v1, %s2386_s16 }
 0x101   : > { %1280 = vrot.lane.b32.xlu1 %v2469_v1, %s2387_s19 }
 0x102   : > { %v671_v23 = vpop.permute.xlu0 %670  ;;  %v685_v24 = vpop.permute.xlu1 %684 }
 0x103   : > { %v717_v25 = vsel %vm690_vm6, %v669_v21, %v671_v23  ;;  %v723_v1 = vsel %vm690_vm6, %v683_v18, %v685_v24  ;;  %v599_v18 = vld [vmem:[%s3302_s1] sm:$0xff] }
 0x104   : > { %792 = vmatprep.subr.mxu0 %v717_v25  ;;  %1301 = vrot.lane.b32.xlu0 %v2479_v3, %s2386_s16 }
 0x105   : > { %1278 = vrot.lane.b32.xlu1 %v2479_v3, %s2387_s19 }
 0x106   : > { %v2683_v26 = vpop.permute.xlu0 %686  ;;  %v667_v27 = vpop.permute.xlu1 %666 }
 0x107   : > { %v716_v28 = vsel %vm690_vm6, %v667_v27, %v669_v21  ;;  %v724_v29 = vsel %vm690_vm6, %v685_v24, %v2683_v26 }
 0x108   : > { %793 = vmatpush1.msra.mxu0 %v716_v28  ;;  %861 = vmatprep.subr.mxu1 %v724_v29 }
 0x109   : > { %862 = vmatpush1.msra.mxu1 %v723_v1  ;;  %1282 = vrot.lane.b32.xlu0 %v2476_v2, %s2387_s19 }
 0x10a   : > { %v657_v30 = vpop.permute.xlu0 %656  ;;  %1407 = vrot.lane.b32.xlu1 %v2497_v5, %s2376_s25 }
 0x10d   : > { %1405 = vrot.lane.b32.xlu0 %v2490_v4, %s2376_s25 }
 0x10e   : > { %v673_v31 = vpop.permute.xlu0 %672  ;;  %v659_v32 = vpop.permute.xlu1 %658  ;;  %1378 = vrot.lane.b32.xlu1 %v2490_v4, %s2383_s13 }
 0x10f   : > { %v712_v33 = vsel %vm690_vm6, %v657_v30, %v659_v32  ;;  %v718_v38 = vsel %vm690_vm6, %v671_v23, %v673_v31 }
 0x110   : > { %794 = vmatprep.subr.mxu0 %v712_v33 }
 0x111   : > { %1376 = vrot.lane.b32.xlu0 %v2466_v0, %s2383_s13 }
 0x112   : > { %v655_v34 = vpop.permute.xlu0 %654  ;;  %v2700_v2 = vpop.permute.xlu1 %674 }
 0x113   : > { %v711_v36 = vsel %vm690_vm6, %v655_v34, %v657_v30  ;;  %v719_v37 = vsel %vm690_vm6, %v673_v31, %v2700_v2 }
 0x114   : > { %795 = vmatpush1.msra.mxu0 %v711_v36  ;;  %863 = vmatprep.subr.mxu1 %v719_v37 }
 0x115   : > { %864 = vmatpush1.msra.mxu1 %v718_v38  ;;  %1409 = vrot.lane.b32.xlu0 %v1277_v35, %s2376_s25 }
 0x116   : > { %v645_v39 = vpop.permute.xlu1 %644 }
 0x11a   : > { %v647_v40 = vpop.permute.xlu0 %646  ;;  %v661_v41 = vpop.permute.xlu1 %660 }
 0x11b   : > { %v707_v42 = vsel %vm690_vm6, %v645_v39, %v647_v40  ;;  %v713_v47 = vsel %vm690_vm6, %v659_v32, %v661_v41 }
 0x11c   : > { %796 = vmatprep.subr.mxu0 %v707_v42 }
 0x11e   : > { %v2709_v43 = vpop.permute.xlu0 %662  ;;  %v643_v44 = vpop.permute.xlu1 %642 }
 0x11f   : > { %v706_v45 = vsel %vm690_vm6, %v643_v44, %v645_v39  ;;  %v714_v46 = vsel %vm690_vm6, %v661_v41, %v2709_v43  ;;  %v387_v39 = vlaneseq }
 0x120   : > { %797 = vmatpush1.msra.mxu0 %v706_v45  ;;  %865 = vmatprep.subr.mxu1 %v714_v46 }
 0x121   : > { %866 = vmatpush1.msra.mxu1 %v713_v47  ;;  %v2754_v42 = vand.u32 127, %v387_v39 }
 0x122   : > { %v633_v48 = vpop.permute.xlu0 %632 }
 0x123   : > { %v2761_v45 = vadd.s32 128, %v2754_v42 }
 0x125   : > { %vm395_vm8 = vcmp.ge.s32.totalorder %v2761_v45, 132 }
 0x126   : > { %v649_v49 = vpop.permute.xlu0 %648  ;;  %v635_v50 = vpop.permute.xlu1 %634 }
 0x127   : > { %v702_v51 = vsel %vm690_vm6, %v633_v48, %v635_v50  ;;  %v708_v56 = vsel %vm690_vm6, %v647_v40, %v649_v49 }
 0x128   : > { %798 = vmatprep.subr.mxu0 %v702_v51 }
 0x12a   : > { %v631_v52 = vpop.permute.xlu0 %630  ;;  %v651_v53 = vpop.permute.xlu1 %650 }
 0x12b   : > { %v701_v54 = vsel %vm690_vm6, %v631_v52, %v633_v48  ;;  %v709_v55 = vsel %vm690_vm6, %v649_v49, %v651_v53  ;;  %v2771_v49 = vadd.s32 384, %v2754_v42  ;;  %v2303_v52 = vsel %vm395_vm8, 1.0, %v2381_v11 }
 0x12c   : > { %799 = vmatpush1.msra.mxu0 %v701_v54  ;;  %867 = vmatprep.subr.mxu1 %v709_v55 }
 0x12d   : > { %868 = vmatpush1.msra.mxu1 %v708_v56  ;;  %vm403_vm9 = vcmp.lt.s32.totalorder %v2771_v49, 484 }
 0x12e   : > { %v621_v57 = vpop.permute.xlu1 %620  ;;  %v2304_v55 = vsel %vm403_vm9, 1.0, %v2381_v11 }
 0x132   : > { %v623_v58 = vpop.permute.xlu0 %622  ;;  %v637_v59 = vpop.permute.xlu1 %636 }
 0x133   : > { %v697_v60 = vsel %vm690_vm6, %v621_v57, %v623_v58  ;;  %v703_v7 = vsel %vm690_vm6, %v635_v50, %v637_v59 }
 0x134   : > { %800 = vmatprep.subr.mxu0 %v697_v60 }
 0x136   : > { %v639_v61 = vpop.permute.xlu0 %638  ;;  %v619_v62 = vpop.permute.xlu1 %618 }
 0x137   : > { %v696_v63 = vsel %vm690_vm6, %v619_v62, %v621_v57  ;;  %v704_v6 = vsel %vm690_vm6, %v637_v59, %v639_v61 }
 0x138   : > { %801 = vmatpush1.msra.mxu0 %v696_v63  ;;  %869 = vmatprep.subr.mxu1 %v704_v6 }
 0x139   : > { %870 = vmatpush1.msra.mxu1 %v703_v7 }
 0x13a   : > { %v609_v8 = vpop.permute.xlu0 %608  ;;  %v611_v9 = vpop.permute.xlu1 %610 }
 0x13b   : > { %v692_v10 = vsel %vm690_vm6, %v609_v8, %v611_v9 }
 0x13c   : > { %802 = vmatprep.subr.mxu0 %v692_v10 }
 0x13e   : > { %v625_v12 = vpop.permute.xlu0 %624  ;;  %v627_v13 = vpop.permute.xlu1 %626 }
 0x13f   : > { %v699_v14 = vsel %vm690_vm6, %v625_v12, %v627_v13  ;;  %v698_v15 = vsel %vm690_vm6, %v623_v58, %v625_v12 }
 0x140   : > { %871 = vmatprep.subr.mxu1 %v699_v14 }
 0x141   : > { %872 = vmatpush1.msra.mxu1 %v698_v15 }
 0x142   : > { %v607_v16 = vpop.permute.xlu0 %606  ;;  %v613_v17 = vpop.permute.xlu1 %612 }
 0x143   : > { %v691_v19 = vsel %vm690_vm6, %v607_v16, %v609_v8  ;;  %v693_v24 = vsel %vm690_vm6, %v611_v9, %v613_v17 }
 0x144   : > { %803 = vmatpush1.msra.mxu0 %v691_v19 }
 0x145   : > { %2310 = vmatmul.mubr.msk.f32.vlgmr.msra.gmra.mxu0 %vm768_vm7, %v599_v18 }
 0x146   : > { %v615_v20 = vpop.permute.xlu0 %614  ;;  %v689_v21 = vpop.permute.xlu1 %688  ;;  %978 = vmatprep.mubr.f32.mxu0 %v2381_v11 }
 0x147   : > { %932 = vmatprep.subr.mxu0 %v689_v21  ;;  %v694_v22 = vsel %vm690_vm6, %v613_v17, %v615_v20  ;;  %v725_v23 = vsel %vm690_vm6, %v2683_v26, %v689_v21 }
 0x148   : > { %873 = vmatprep.subr.mxu1 %v694_v22  ;;  %933 = vmatpush1.msra.mxu0 %v725_v23 }
 0x149   : > { %874 = vmatpush1.msra.mxu1 %v693_v24 }
 0x14a   : > { %v677_v25 = vpop.permute.xlu0 %676  ;;  %2311 = vmatmul.mubr.msk.f32.vlgmr.msra.gmra.mxu1 %vm768_vm7, %v599_v18  ;;  %v665_v27 = vpop.permute.xlu1 %664 }
 0x14b   : > { %934 = vmatprep.subr.mxu0 %v677_v25  ;;  %v720_v28 = vsel %vm690_vm6, %v2700_v2, %v677_v25  ;;  %1190 = vmatprep.mubr.f32.mxu1 %v2381_v11  ;;  %v715_v26 = vsel %vm690_vm6, %v2709_v43, %v665_v27 }
 0x14c   : > { %935 = vmatpush1.msra.mxu0 %v720_v28 }
 0x14d   : > { %936 = vmatprep.subr.mxu0 %v665_v27 }
 0x14e   : > { %v653_v29 = vpop.permute.xlu0 %652  ;;  %937 = vmatpush1.msra.mxu0 %v715_v26  ;;  %v641_v1 = vpop.permute.xlu1 %640 }
 0x14f   : > { %938 = vmatprep.subr.mxu0 %v653_v29  ;;  %v710_v30 = vsel %vm690_vm6, %v651_v53, %v653_v29  ;;  %v705_v31 = vsel %vm690_vm6, %v639_v61, %v641_v1 }
 0x150   : > { %939 = vmatpush1.msra.mxu0 %v710_v30 }
 0x151   : > { %940 = vmatprep.subr.mxu0 %v641_v1 }
 0x152   : > { %v629_v32 = vpop.permute.xlu0 %628  ;;  %941 = vmatpush1.msra.mxu0 %v705_v31  ;;  %v617_v33 = vpop.permute.xlu1 %616 }
 0x153   : > { %942 = vmatprep.subr.mxu0 %v629_v32  ;;  %v700_v34 = vsel %vm690_vm6, %v627_v13, %v629_v32  ;;  %v695_v2 = vsel %vm690_vm6, %v615_v20, %v617_v33 }
 0x154   : > { %943 = vmatpush1.msra.mxu0 %v700_v34 }
 0x155   : > { %944 = vmatprep.subr.mxu0 %v617_v33 }
 0x156   : > { %945 = vmatpush1.msra.mxu0 %v695_v2  ;;  %v2819_v6 = vpop.permute.xlu1 %1403 }
 0x157   : > { %2312 = vmatmul.mubr.msk.f32.vlgmr.msra.gmra.mxu0 %vm768_vm7, %v599_v18  ;;  %v1423_v18 = vld [vmem:[%s3307_s6] sm:$0xff] }
 0x158   : > { %1261 = vmatprep.mubr.f32.mxu0 %v2381_v11 }
 0x15a   : > { %v2828_v9 = vpop.permute.xlu1 %1372 }
 0x15e   : > { %v2835_v13 = vpop.permute.xlu1 %1370 }
 0x15f   : > { %v604_v35 = vpop.permute.xlu0 %603 }
 0x162   : > { %v2847_v15 = vpop.permute.xlu1 %1351 }
 0x163   : > { %v2815_v62 = vpop.permute.xlu0 %1401 }
 0x166   : > { %v2855_v17 = vpop.permute.xlu1 %1326 }
 0x167   : > { %v2823_v8 = vpop.permute.xlu0 %1399 }
 0x16a   : > { %v2868_v20 = vpop.permute.xlu1 %1324 }
 0x16b   : > { %v2830_v12 = vpop.permute.xlu0 %1374 }
 0x16f   : > { %v2841_v14 = vpop.permute.xlu0 %1349 }
 0x173   : > { %v2849_v16 = vpop.permute.xlu0 %1347 }
 0x177   : > { %v2864_v19 = vpop.permute.xlu0 %1328 }
 0x17b   : > { %v2870_v21 = vpop.permute.xlu0 %1303 }
 0x17f   : > { %v2878_v22 = vpop.permute.xlu0 %1301 }
 0x183   : > { %v2882_v24 = vpop.permute.xlu0 %1282 }
 0x187   : > { %v2886_v27 = vpop.permute.xlu0 %1405 }
 0x18b   : > { %v2890_v26 = vpop.permute.xlu0 %1376 }
 0x18f   : > { %v2894_v29 = vpop.permute.xlu0 %1409 }
 0x205   : > { %v838_v40 = vpop.f32.mrf.mxu0 }
 0x206   : > { %v839_v41 = vadd.f32 %v838_v40, %v604_v35 }
 0x207   : > { %v840_v44 = vpop.f32.mrf.mxu0 }
 0x208   : > { %v985_v43 = vmax.f32 %v839_v41, 0.0  ;;  %v841_v47 = vadd.f32 %v840_v44, %v604_v35 }
 0x20a   : > { %v909_v36 = vpop.f32.mrf.mxu1  ;;  %v2767_v46 = vmul.f32 0.0, %v985_v43  ;;  %v986_v50 = vmax.f32 %v841_v47, 0.0 }
 0x20b   : > { %v910_v37 = vadd.f32 %v909_v36, %v604_v35 }
 0x20c   : > { %v911_v48 = vpop.f32.mrf.mxu1  ;;  %v2783_v53 = vmul.f32 %v2303_v52, %v986_v50 }
 0x20d   : > { %v2748_v38 = vmax.f32 %v910_v37, 0.0  ;;  %v912_v51 = vadd.f32 %v911_v48, %v604_v35 }
 0x20f   : > { %1082 = vrot.lane.b32.xlu0 %v2748_v38, %s2383_s13  ;;  %1100 = vrot.lane.b32.xlu1 %v2748_v38, %s2376_s25  ;;  %v988_v54 = vmax.f32 %v912_v51, 0.0 }
 0x211   : > { %v2790_v56 = vmul.f32 %v2304_v55, %v988_v54 }
 0x213   : > { %1044 = vrot.lane.b32.xlu0 %v2748_v38, %s2385_s15  ;;  %1063 = vrot.lane.b32.xlu1 %v2748_v38, %s2384_s14 }
 0x217   : > { %1006 = vrot.lane.b32.xlu0 %v2748_v38, %s2387_s19  ;;  %1025 = vrot.lane.b32.xlu1 %v2748_v38, %s2386_s16  ;;  %v980_v57 = vpop.f32.mrf.mxu0 }
 0x218   : > { %v981_v58 = vadd.f32 %v980_v57, %v604_v35 }
 0x219   : > { %v982_v61 = vpop.f32.mrf.mxu0 }
 0x21a   : > { %v989_v59 = vmax.f32 %v981_v58, 0.0  ;;  %v983_v63 = vadd.f32 %v982_v61, %v604_v35 }
 0x21b   : > { %1059 = vrot.lane.b32.xlu0 %v2767_v46, %s2384_s14  ;;  %1078 = vrot.lane.b32.xlu1 %v2767_v46, %s2383_s13 }
 0x21c   : > { %v995_v60 = vmul.f32 0.0, %v989_v59  ;;  %v990_v7 = vmax.f32 %v983_v63, 0.0 }
 0x21e   : > { %v996_v10 = vmul.f32 0.0, %v990_v7 }
 0x21f   : > { %1021 = vrot.lane.b32.xlu0 %v2767_v46, %s2386_s16  ;;  %1040 = vrot.lane.b32.xlu1 %v2767_v46, %s2385_s15 }
 0x223   : > { %1098 = vrot.lane.b32.xlu0 %v2783_v53, %s2376_s25  ;;  %1002 = vrot.lane.b32.xlu1 %v2767_v46, %s2387_s19 }
 0x227   : > { %1061 = vrot.lane.b32.xlu0 %v2783_v53, %s2384_s14  ;;  %1102 = vrot.lane.b32.xlu1 %v2790_v56, %s2376_s25 }
 0x22b   : > { %1023 = vrot.lane.b32.xlu0 %v2783_v53, %s2386_s16  ;;  %1080 = vrot.lane.b32.xlu1 %v2783_v53, %s2383_s13 }
 0x22f   : > { %1084 = vrot.lane.b32.xlu0 %v2790_v56, %s2383_s13  ;;  %1042 = vrot.lane.b32.xlu1 %v2783_v53, %s2385_s15 }
 0x233   : > { %1046 = vrot.lane.b32.xlu0 %v2790_v56, %s2385_s15  ;;  %1004 = vrot.lane.b32.xlu1 %v2783_v53, %s2387_s19 }
 0x237   : > { %1008 = vrot.lane.b32.xlu0 %v2790_v56, %s2387_s19  ;;  %1065 = vrot.lane.b32.xlu1 %v2790_v56, %s2384_s14 }
 0x23b   : > { %1027 = vrot.lane.b32.xlu1 %v2790_v56, %s2386_s16  ;;  %1104 = vrot.lane.b32.xlu0 %v995_v60, %s2376_s25 }
 0x23f   : > { %1086 = vrot.lane.b32.xlu1 %v995_v60, %s2383_s13  ;;  %1067 = vrot.lane.b32.xlu0 %v995_v60, %s2384_s14 }
 0x243   : > { %1048 = vrot.lane.b32.xlu1 %v995_v60, %s2385_s15  ;;  %1029 = vrot.lane.b32.xlu0 %v995_v60, %s2386_s16 }
 0x247   : > { %1010 = vrot.lane.b32.xlu1 %v995_v60, %s2387_s19  ;;  %1355 = vrot.lane.b32.xlu0 %v2490_v4, %s2384_s14 }
 0x24b   : > { %1106 = vrot.lane.b32.xlu1 %v996_v10, %s2376_s25  ;;  %1330 = vrot.lane.b32.xlu0 %v2466_v0, %s2385_s15 }
 0x24f   : > { %1353 = vrot.lane.b32.xlu1 %v2466_v0, %s2384_s14  ;;  %1357 = vrot.lane.b32.xlu0 %v2497_v5, %s2384_s14 }
 0x253   : > { %1380 = vrot.lane.b32.xlu1 %v2497_v5, %s2383_s13  ;;  %1309 = vrot.lane.b32.xlu0 %v2490_v4, %s2386_s16 }
 0x257   : > { %1332 = vrot.lane.b32.xlu1 %v2490_v4, %s2385_s15  ;;  %1284 = vrot.lane.b32.xlu0 %v2466_v0, %s2387_s19 }
 0x25b   : > { %1307 = vrot.lane.b32.xlu1 %v2466_v0, %s2386_s16  ;;  %1311 = vrot.lane.b32.xlu0 %v2497_v5, %s2386_s16  ;;  %v2874_v0 = vpop.permute.xlu1 %1305 }
 0x25f   : > { %1334 = vrot.lane.b32.xlu1 %v2497_v5, %s2385_s15  ;;  %1426 = vperm.xlu0 %2359, %v1423_v18   ;;  %v2880_v23 = vpop.permute.xlu1 %1280  ;;  %s386_s15 = scalar_lea.vmem %s3312_s11, %s2324_s12 }
 0x263   : > { %1286 = vrot.lane.b32.xlu1 %v2490_v4, %s2387_s19  ;;  %v2884_v25 = vpop.permute.xlu1 %1278 }
 0x267   : > { %1288 = vrot.lane.b32.xlu1 %v2497_v5, %s2387_s19  ;;  %v2888_v28 = vpop.permute.xlu1 %1407 }
 0x26b   : > { %v2892_v4 = vpop.permute.xlu1 %1378 }
 0x281   : > { %v2896_v1 = vpop.permute.xlu0 %1082  ;;  %v1101_v5 = vpop.permute.xlu1 %1100 }
 0x285   : > { %v2898_v30 = vpop.permute.xlu0 %1044  ;;  %v2900_v31 = vpop.permute.xlu1 %1063 }
 0x289   : > { %v2902_v32 = vpop.permute.xlu0 %1006  ;;  %v2904_v33 = vpop.permute.xlu1 %1025 }
 0x28d   : > { %v1060_v34 = vpop.permute.xlu0 %1059  ;;  %v1079_v2 = vpop.permute.xlu1 %1078 }
 0x291   : > { %v1022_v35 = vpop.permute.xlu0 %1021  ;;  %v1041_v36 = vpop.permute.xlu1 %1040 }
 0x295   : > { %v1099_v37 = vpop.permute.xlu0 %1098  ;;  %v1003_v39 = vpop.permute.xlu1 %1002 }
 0x296   : > { %v1108_v44 = vsel %vm557_vm2, %v1099_v37, %v1101_v5 }
 0x299   : > { %v1062_v40 = vpop.permute.xlu0 %1061  ;;  %v2906_v41 = vpop.permute.xlu1 %1102 }
 0x29a   : > { %v1109_v43 = vsel %vm557_vm2, %v1101_v5, %v2906_v41  ;;  %v1071_v52 = vsel %vm1069_vm11, %v1062_v40, %v2900_v31  ;;  %v1070_v57 = vsel %vm1069_vm11, %v1060_v34, %v1062_v40  ;;  %v2933_v5 = vld [vmem:[%s3304_s3] sm:$0xff]  ;;  %v1337_v40 = vsel %vm1050_vm12, %v2855_v17, %v2864_v19 }
 0x29b   : > { %1144 = vmatprep.subr.mxu1 %v1109_v43 }
 0x29c   : > { %1145 = vmatpush1.msra.mxu1 %v1108_v44  ;;  %v1314_v44 = vsel %vm1031_vm13, %v2870_v21, %v2874_v0 }
 0x29d   : > { %v1024_v47 = vpop.permute.xlu0 %1023  ;;  %v1081_v48 = vpop.permute.xlu1 %1080 }
 0x29e   : > { %v1090_v50 = vsel %vm1088_vm10, %v1081_v48, %v2896_v1  ;;  %v1089_v51 = vsel %vm1088_vm10, %v1079_v2, %v1081_v48  ;;  %v1033_v60 = vsel %vm1031_vm13, %v1024_v47, %v2904_v33  ;;  %v1032_v7 = vsel %vm1031_vm13, %v1022_v35, %v1024_v47  ;;  %v2981_v48 = vld [vmem:[%s3306_s5] sm:$0xff] }
 0x29f   : > { %1146 = vmatprep.subr.mxu1 %v1090_v50  ;;  %v1412_v35 = vsel %vm557_vm2, %v2815_v62, %v2819_v6 }
 0x2a0   : > { %1147 = vmatpush1.msra.mxu1 %v1089_v51 }
 0x2a1   : > { %v2916_v54 = vpop.permute.xlu0 %1084  ;;  %1148 = vmatprep.subr.mxu1 %v1071_v52  ;;  %v1043_v55 = vpop.permute.xlu1 %1042 }
 0x2a2   : > { %1149 = vmatpush1.msra.mxu1 %v1070_v57  ;;  %v1052_v58 = vsel %vm1050_vm12, %v1043_v55, %v2898_v30  ;;  %v1051_v59 = vsel %vm1050_vm12, %v1041_v36, %v1043_v55  ;;  %v1411_v36 = vsel %vm557_vm2, %v2823_v8, %v2815_v62  ;;  %v1360_v62 = vsel %vm1069_vm11, %v2841_v14, %v2847_v15 }
 0x2a3   : > { %1150 = vmatprep.subr.mxu1 %v1052_v58  ;;  %v1359_v8 = vsel %vm1069_vm11, %v2849_v16, %v2841_v14  ;;  %v1313_v14 = vsel %vm1031_vm13, %v2878_v22, %v2870_v21  ;;  %v1291_v16 = vsel %vm1012_vm14, %v2880_v23, %v2882_v24  ;;  %v2984_v21 = vld [vmem:[%s2463_s22 + $0x8] sm:$0xff] }
 0x2a4   : > { %1151 = vmatpush1.msra.mxu1 %v1051_v59 }
 0x2a5   : > { %v2924_v61 = vpop.permute.xlu0 %1046  ;;  %1152 = vmatprep.subr.mxu1 %v1033_v60  ;;  %v1005_v63 = vpop.permute.xlu1 %1004 }
 0x2a6   : > { %1153 = vmatpush1.msra.mxu1 %v1032_v7  ;;  %v1014_v10 = vsel %vm1012_vm14, %v1005_v63, %v2902_v32  ;;  %v1013_v18 = vsel %vm1012_vm14, %v1003_v39, %v1005_v63  ;;  %v1053_v7 = vsel %vm1050_vm12, %v2898_v30, %v2924_v61 }
 0x2a7   : > { %1154 = vmatprep.subr.mxu1 %v1014_v10 }
 0x2a8   : > { %1155 = vmatpush1.msra.mxu1 %v1013_v18 }
 0x2a9   : > { %v2935_v34 = vpop.permute.xlu0 %1008  ;;  %1156 = vmatprep.subr.mxu1 %v2783_v53  ;;  %v1066_v2 = vpop.permute.xlu1 %1065  ;;  %v1383_v53 = vsel %vm1088_vm10, %v2828_v9, %v2830_v12 }
 0x2aa   : > { %1157 = vmatpush1.msra.mxu1 %v2767_v46  ;;  %v1382_v46 = vsel %vm1088_vm10, %v2835_v13, %v2828_v9  ;;  %v1336_v9 = vsel %vm1050_vm12, %v2868_v20, %v2855_v17  ;;  %v1290_v17 = vsel %vm1012_vm14, %v2884_v25, %v2880_v23  ;;  %v1415_v25 = vsel %vm557_vm2, %v2888_v28, %v2894_v29 }
 0x2ab   : > { %1450 = vmatprep.subr.mxu1 %v1412_v35  ;;  %2313 = vmatmul.mubr.msk.f32.vlgmr.msra.gmra.mxu1 %vm768_vm7, %v2933_v5  ;;  %v1072_v60 = vsel %vm1069_vm11, %v2900_v31, %v1066_v2 }
 0x2ac   : > { %1451 = vmatpush1.msra.mxu1 %v1411_v36  ;;  %1496 = vmatprep.mubr.f32.mxu1 %v2381_v11 }
 0x2ad   : > { %v1105_v37 = vpop.permute.xlu0 %1104  ;;  %1452 = vmatprep.subr.mxu1 %v1383_v53  ;;  %v1028_v39 = vpop.permute.xlu1 %1027 }
 0x2ae   : > { %1453 = vmatpush1.msra.mxu1 %v1382_v46  ;;  %v1034_v31 = vsel %vm1031_vm13, %v2904_v33, %v1028_v39  ;;  %v1414_v33 = vsel %vm557_vm2, %v2886_v27, %v2888_v28 }
 0x2af   : > { %1454 = vmatprep.subr.mxu1 %v1360_v62 }
 0x2b0   : > { %1455 = vmatpush1.msra.mxu1 %v1359_v8  ;;  %v3059_v8 = vld [vmem:[%s2463_s22 + $0x10] sm:$0xff] }
 0x2b1   : > { %v1068_v13 = vpop.permute.xlu0 %1067  ;;  %1456 = vmatprep.subr.mxu1 %v1337_v40  ;;  %v1087_v43 = vpop.permute.xlu1 %1086  ;;  %v3065_v40 = vld [vmem:[%s2463_s22 + $0x28] sm:$0xff] }
 0x2b2   : > { %1457 = vmatpush1.msra.mxu1 %v1336_v9  ;;  %v1092_v55 = vsel %vm1088_vm10, %v2916_v54, %v1087_v43  ;;  %v1073_v59 = vsel %vm1069_vm11, %v1066_v2, %v1068_v13  ;;  %v424_v9 = vcvt.s32.f32 %v2754_v42 }
 0x2b3   : > { %1458 = vmatprep.subr.mxu1 %v1314_v44 }
 0x2b4   : > { %1459 = vmatpush1.msra.mxu1 %v1313_v14  ;;  %v429_v13 = vmul.f32 0.045454547, %v424_v9  ;;  %v425_v14 = vcvt.s32.f32 %v2761_v45 }
 0x2b5   : > { %v1030_v20 = vpop.permute.xlu0 %1029  ;;  %1460 = vmatprep.subr.mxu1 %v1291_v16  ;;  %v1049_v47 = vpop.permute.xlu1 %1048 }
 0x2b6   : > { %1461 = vmatpush1.msra.mxu1 %v1290_v17  ;;  %v434_v43 = vfloor.f32 %v429_v13  ;;  %v430_v17 = vmul.f32 0.045454547, %v425_v14 }
 0x2b7   : > { %1462 = vmatprep.subr.mxu1 %v2984_v21 }
 0x2b8   : > { %1463 = vmatpush1.msra.mxu1 %v2479_v3  ;;  %v1110_v3 = vsel %vm557_vm2, %v2906_v41, %v1105_v37  ;;  %v1054_v41 = vsel %vm1050_vm12, %v2924_v61, %v1049_v47  ;;  %v1015_v61 = vsel %vm1012_vm14, %v2902_v32, %v2935_v34  ;;  %v1413_v32 = vsel %vm557_vm2, %v2819_v6, %v2886_v27 }
 0x2b9   : > { %v1356_v22 = vpop.permute.xlu0 %1355  ;;  %2315 = vmatmul.mubr.msk.f32.vlgmr.msra.gmra.mxu1 %vm768_vm7, %v2981_v48  ;;  %1592 = vmatprep.subr.mxu1 %v2894_v29  ;;  %v1011_v23 = vpop.permute.xlu1 %1010  ;;  %v1091_v29 = vsel %vm1088_vm10, %v2896_v1, %v2916_v54  ;;  %v1035_v54 = vsel %vm1031_vm13, %v1028_v39, %v1030_v20  ;;  %v3054_v39 = vld [vmem:[%s2463_s22 + $0x18] sm:$0xff]  ;;  %v2326_v44 = vtrunc.f32 %v434_v43  ;;  %v435_v47 = vfloor.f32 %v430_v17 }
 0x2ba   : > { %1593 = vmatpush1.msra.mxu1 %v1415_v25  ;;  %1638 = vmatprep.mubr.f32.mxu1 %v2381_v11  ;;  %v1016_v30 = vsel %vm1012_vm14, %v2935_v34, %v1011_v23 }
 0x2bb   : > { %v2327_v16 = vcvt.f32.s32 %v2326_v44  ;;  %v2328_v23 = vtrunc.f32 %v435_v47 }
 0x2bd   : > { %v1331_v50 = vpop.permute.xlu0 %1330  ;;  %v1107_v51 = vpop.permute.xlu1 %1106  ;;  %v444_v20 = vmul.u32 22, %v2327_v16 }
 0x2be   : > { %v1111_v52 = vsel %vm557_vm2, %v1105_v37, %v1107_v51  ;;  %v1338_v53 = vsel %vm1050_vm12, %v2864_v19, %v1331_v50  ;;  %v390_v51 = vadd.s32 256, %v2754_v42 }
 0x2bf   : > { %1215 = vmatprep.subr.mxu0 %v1111_v52 }
 0x2c0   : > { %1216 = vmatpush1.msra.mxu0 %v1110_v3 }
 0x2c1   : > { %v1358_v57 = vpop.permute.xlu0 %1357  ;;  %1217 = vmatprep.subr.mxu0 %v1092_v55  ;;  %v1354_v58 = vpop.permute.xlu1 %1353 }
 0x2c2   : > { %1218 = vmatpush1.msra.mxu0 %v1091_v29  ;;  %v1363_v18 = vsel %vm1069_vm11, %v1356_v22, %v1358_v57  ;;  %v1362_v28 = vsel %vm1069_vm11, %v1354_v58, %v1356_v22  ;;  %v449_v22 = vsub.s32 %v2754_v42, %v444_v20 }
 0x2c3   : > { %1219 = vmatprep.subr.mxu0 %v1073_v59  ;;  %v426_v59 = vcvt.s32.f32 %v390_v51 }
 0x2c4   : > { %1220 = vmatpush1.msra.mxu0 %v1072_v60  ;;  %vm454_vm15 = vcmp.ge.s32.totalorder %v449_v22, 3  ;;  %vm459_vm8 = vcmp.lt.s32.totalorder %v449_v22, 19 }
 0x2c5   : > { %1221 = vmatprep.subr.mxu0 %v1054_v41  ;;  %v1381_v63 = vpop.permute.xlu1 %1380  ;;  %v1310_v10 = vpop.permute.xlu0 %1309  ;;  %vm464_vm9 = vmand %vm454_vm15, %vm459_vm8 }
 0x2c6   : > { %v1386_v1 = vsel %vm1088_vm10, %v2892_v4, %v1381_v63  ;;  %1222 = vmatpush1.msra.mxu0 %v1053_v7  ;;  %1594 = vmatprep.subr.mxu1 %v1381_v63  ;;  %v2305_v29 = vsel %vm464_vm9, 1.0, %v2381_v11 }
 0x2c7   : > { %1223 = vmatprep.subr.mxu0 %v1035_v54  ;;  %1595 = vmatpush1.msra.mxu1 %v1386_v1  ;;  %v431_v54 = vmul.f32 0.045454547, %v426_v59 }
 0x2c8   : > { %1224 = vmatpush1.msra.mxu0 %v1034_v31  ;;  %1596 = vmatprep.subr.mxu1 %v1358_v57 }
 0x2c9   : > { %1225 = vmatprep.subr.mxu0 %v1016_v30  ;;  %1597 = vmatpush1.msra.mxu1 %v1363_v18  ;;  %v1333_v2 = vpop.permute.xlu1 %1332  ;;  %v1285_v35 = vpop.permute.xlu0 %1284  ;;  %v436_v31 = vfloor.f32 %v431_v54 }
 0x2ca   : > { %1226 = vmatpush1.msra.mxu0 %v1015_v61  ;;  %v1292_v37 = vsel %vm1012_vm14, %v2882_v24, %v1285_v35  ;;  %v3070_v24 = vld [vmem:[%s2463_s22 + $0x20] sm:$0xff] }
 0x2cb   : > { %1227 = vmatprep.subr.mxu0 %v2790_v56  ;;  %v1385_v56 = vsel %vm1088_vm10, %v2890_v26, %v2892_v4  ;;  %v1339_v4 = vsel %vm1050_vm12, %v1331_v50, %v1333_v2  ;;  %v2330_v61 = vtrunc.f32 %v436_v31 }
 0x2cc   : > { %1228 = vmatpush1.msra.mxu0 %v2748_v38  ;;  %v1384_v38 = vsel %vm1088_vm10, %v2830_v12, %v2890_v26 }
 0x2cd   : > { %2314 = vmatmul.mubr.msk.f32.vlgmr.msra.gmra.mxu0 %vm768_vm7, %v2933_v5  ;;  %1521 = vmatprep.subr.mxu0 %v1414_v33  ;;  %v1308_v36 = vpop.permute.xlu1 %1307  ;;  %v1361_v5 = vsel %vm1069_vm11, %v2847_v15, %v1354_v58  ;;  %v1312_v34 = vpop.permute.xlu0 %1311  ;;  %v392_v58 = vadd.s32 512, %v2754_v42 }
 0x2ce   : > { %1522 = vmatpush1.msra.mxu0 %v1413_v32  ;;  %1567 = vmatprep.mubr.f32.mxu0 %v2381_v11  ;;  %v1317_v12 = vsel %vm1031_vm13, %v1310_v10, %v1312_v34  ;;  %v1316_v15 = vsel %vm1031_vm13, %v1308_v36, %v1310_v10  ;;  %v1315_v26 = vsel %vm1031_vm13, %v2874_v0, %v1308_v36 }
 0x2cf   : > { %1523 = vmatprep.subr.mxu0 %v1385_v56  ;;  %v428_v7 = vcvt.s32.f32 %v392_v58 }
 0x2d0   : > { %1524 = vmatpush1.msra.mxu0 %v1384_v38 }
 0x2d1   : > { %1525 = vmatprep.subr.mxu0 %v1362_v28  ;;  %v1335_v6 = vpop.permute.xlu1 %1334  ;;  %v433_v10 = vmul.f32 0.045454547, %v428_v7  ;;  %v427_v28 = vcvt.s32.f32 %v2771_v49 }
 0x2d2   : > { %v1340_v27 = vsel %vm1050_vm12, %v1333_v2, %v1335_v6  ;;  %1526 = vmatpush1.msra.mxu0 %v1361_v5  ;;  %1598 = vmatprep.subr.mxu1 %v1335_v6 }
 0x2d3   : > { %1527 = vmatprep.subr.mxu0 %v1339_v4  ;;  %1599 = vmatpush1.msra.mxu1 %v1340_v27  ;;  %v438_v18 = vfloor.f32 %v433_v10  ;;  %v432_v6 = vmul.f32 0.045454547, %v427_v28 }
 0x2d4   : > { %1528 = vmatpush1.msra.mxu0 %v1338_v53  ;;  %1600 = vmatprep.subr.mxu1 %v1312_v34 }
 0x2d5   : > { %1529 = vmatprep.subr.mxu0 %v1316_v15  ;;  %1601 = vmatpush1.msra.mxu1 %v1317_v12  ;;  %v1287_v46 = vpop.permute.xlu1 %1286  ;;  %v2334_v33 = vtrunc.f32 %v438_v18  ;;  %v437_v53 = vfloor.f32 %v432_v6 }
 0x2d6   : > { %1530 = vmatpush1.msra.mxu0 %v1315_v26  ;;  %v1293_v19 = vsel %vm1012_vm14, %v1285_v35, %v1287_v46  ;;  %v2331_v35 = vcvt.f32.s32 %v2330_v61 }
 0x2d7   : > { %1531 = vmatprep.subr.mxu0 %v1293_v19  ;;  %v2335_v36 = vcvt.f32.s32 %v2334_v33  ;;  %v2332_v19 = vtrunc.f32 %v437_v53 }
 0x2d8   : > { %1532 = vmatpush1.msra.mxu0 %v1292_v37  ;;  %v446_v32 = vmul.u32 22, %v2331_v35 }
 0x2d9   : > { %1533 = vmatprep.subr.mxu0 %v3054_v39  ;;  %v1289_v62 = vpop.permute.xlu1 %1288  ;;  %v448_v56 = vmul.u32 22, %v2335_v36  ;;  %v2333_v43 = vcvt.f32.s32 %v2332_v19 }
 0x2da   : > { %v1294_v0 = vsel %vm1012_vm14, %v1287_v46, %v1289_v62  ;;  %1534 = vmatpush1.msra.mxu0 %v3059_v8  ;;  %1602 = vmatprep.subr.mxu1 %v1289_v62  ;;  %v3084_v52 = vpop.permute.xlu0 %1426  ;;  %v451_v38 = vsub.s32 %v390_v51, %v446_v32 }
 0x2db   : > { %2316 = vmatmul.mubr.msk.f32.vlgmr.msra.gmra.mxu0 %vm768_vm7, %v2981_v48  ;;  %1603 = vmatpush1.msra.mxu1 %v1294_v0  ;;  %v453_v34 = vsub.s32 %v392_v58, %v448_v56  ;;  %v447_v14 = vmul.u32 22, %v2333_v43 }
 0x2dc   : > { %1604 = vmatprep.subr.mxu1 %v3065_v40  ;;  %1943 = vmatprep.mubr.f32.mxu0 %v2381_v11  ;;  %vm456_vm13 = vcmp.ge.s32.totalorder %v451_v38, 3  ;;  %vm461_vm14 = vcmp.lt.s32.totalorder %v451_v38, 19 }
 0x2dd   : > { %1605 = vmatpush1.msra.mxu1 %v3070_v24  ;;  %vm466_vm15 = vmand %vm456_vm13, %vm461_vm14  ;;  %vm458_vm8 = vcmp.ge.s32.totalorder %v453_v34, 3  ;;  %vm463_vm9 = vcmp.lt.s32.totalorder %v453_v34, 19  ;;  %v452_v16 = vsub.s32 %v2771_v49, %v447_v14 }
 0x2de   : > { %2317 = vmatmul.mubr.msk.f32.vlgmr.msra.gmra.mxu1 %vm768_vm7, %v2981_v48  ;;  %v2329_v48 = vcvt.f32.s32 %v2328_v23  ;;  %v2307_v15 = vsel %vm466_vm15, 1.0, %v2381_v11 }
 0x2df   : > { %2014 = vmatprep.mubr.f32.mxu1 %v2381_v11 }
 0x2e0   : > { %v445_v55 = vmul.u32 22, %v2329_v48 }
 0x2e2   : > { %v450_v41 = vsub.s32 %v2761_v45, %v445_v55 }
 0x2e4   : > { %vm455_vm10 = vcmp.ge.s32.totalorder %v450_v41, 3  ;;  %vm460_vm11 = vcmp.lt.s32.totalorder %v450_v41, 19 }
 0x2e5   : > { %vm465_vm12 = vmand %vm455_vm10, %vm460_vm11  ;;  %vm457_vm11 = vcmp.ge.s32.totalorder %v452_v16, 3 }
 0x2e6   : > { %v2306_v30 = vsel %vm465_vm12, 1.0, %v2381_v11  ;;  %vm468_vm10 = vmand %vm458_vm8, %vm463_vm9  ;;  %vm462_vm12 = vcmp.lt.s32.totalorder %v452_v16, 19 }
 0x2e7   : > { %v2309_v0 = vsel %vm468_vm10, 1.0, %v2381_v11  ;;  %vm467_vm13 = vmand %vm457_vm11, %vm462_vm12 }
 0x2e8   : > { %v2308_v22 = vsel %vm467_vm13, 1.0, %v2381_v11 }
 0x36b   : > { %v3079_v25 = vpop.f32.mrf.mxu1 }
 0x36d   : > { %v3081_v50 = vpop.f32.mrf.mxu1 }
 0x379   : > { %v1498_v3 = vpop.f32.mrf.mxu1 }
 0x37a   : > { %v1499_v57 = vadd.f32 %v1498_v3, %v3084_v52 }
 0x37b   : > { %v1500_v1 = vpop.f32.mrf.mxu1 }
 0x37c   : > { %v1644_v60 = vmax.f32 %v1499_v57, 0.0  ;;  %v1501_v42 = vadd.f32 %v1500_v1, %v3084_v52 }
 0x37e   : > { %v3090_v63 = vmul.f32 %v2305_v29, %v1644_v60  ;;  %v1645_v45 = vmax.f32 %v1501_v42, 0.0 }
 0x380   : > { %1715 = vrot.lane.b32.xlu0 %v3090_v63, %s2375_s24  ;;  %1729 = vrot.lane.b32.xlu1 %v3090_v63, %s2374_s23  ;;  %v1650_v2 = vmul.f32 %v2306_v30, %v1645_v45 }
 0x384   : > { %1687 = vrot.lane.b32.xlu0 %v3090_v63, %s2377_s26  ;;  %1701 = vrot.lane.b32.xlu1 %v3090_v63, %s2376_s25 }
 0x388   : > { %1659 = vrot.lane.b32.xlu0 %v3090_v63, %s2379_s28  ;;  %1673 = vrot.lane.b32.xlu1 %v3090_v63, %s2378_s27 }
 0x38c   : > { %1717 = vrot.lane.b32.xlu0 %v1650_v2, %s2375_s24  ;;  %1731 = vrot.lane.b32.xlu1 %v1650_v2, %s2374_s23 }
 0x38d   : > { %v3113_v5 = vpop.f32.mrf.mxu0 }
 0x38f   : > { %v3116_v27 = vpop.f32.mrf.mxu0 }
 0x390   : > { %1689 = vrot.lane.b32.xlu0 %v1650_v2, %s2377_s26  ;;  %1703 = vrot.lane.b32.xlu1 %v1650_v2, %s2376_s25 }
 0x394   : > { %1661 = vrot.lane.b32.xlu0 %v1650_v2, %s2379_s28  ;;  %1675 = vrot.lane.b32.xlu1 %v1650_v2, %s2378_s27 }
 0x398   : > { %1752 = vrot.lane.b32.xlu1 %v1650_v2, %s2380_s29 }
 0x39b   : > { %v1569_v4 = vpop.f32.mrf.mxu0 }
 0x39c   : > { %v1570_v12 = vadd.f32 %v1569_v4, %v3084_v52 }
 0x39d   : > { %v1571_v17 = vpop.f32.mrf.mxu0 }
 0x39e   : > { %v1646_v26 = vmax.f32 %v1570_v12, 0.0  ;;  %v1640_v46 = vpop.f32.mrf.mxu1  ;;  %v1572_v20 = vadd.f32 %v1571_v17, %v3084_v52 }
 0x39f   : > { %v1641_v37 = vadd.f32 %v1640_v46, %v3084_v52 }
 0x3a0   : > { %v1651_v62 = vmul.f32 %v2307_v15, %v1646_v26  ;;  %v1642_v9 = vpop.f32.mrf.mxu1  ;;  %v1647_v47 = vmax.f32 %v1572_v20, 0.0 }
 0x3a1   : > { %v1648_v13 = vmax.f32 %v1641_v37, 0.0 }
 0x3a2   : > { %1719 = vrot.lane.b32.xlu1 %v1651_v62, %s2375_s24  ;;  %1733 = vrot.lane.b32.xlu0 %v1651_v62, %s2374_s23  ;;  %v1652_v49 = vmul.f32 %v2308_v22, %v1647_v47 }
 0x3a3   : > { %v3124_v44 = vmul.f32 %v2309_v0, %v1648_v13 }
 0x3a6   : > { %1723 = vrot.lane.b32.xlu1 %v3124_v44, %s2375_s24  ;;  %1737 = vrot.lane.b32.xlu0 %v3124_v44, %s2374_s23 }
 0x3aa   : > { %1691 = vrot.lane.b32.xlu1 %v1651_v62, %s2377_s26  ;;  %1705 = vrot.lane.b32.xlu0 %v1651_v62, %s2376_s25 }
 0x3ae   : > { %1695 = vrot.lane.b32.xlu1 %v3124_v44, %s2377_s26  ;;  %1709 = vrot.lane.b32.xlu0 %v3124_v44, %s2376_s25 }
 0x3b2   : > { %1663 = vrot.lane.b32.xlu1 %v1651_v62, %s2379_s28  ;;  %1677 = vrot.lane.b32.xlu0 %v1651_v62, %s2378_s27 }
 0x3b6   : > { %1667 = vrot.lane.b32.xlu1 %v3124_v44, %s2379_s28  ;;  %1681 = vrot.lane.b32.xlu0 %v3124_v44, %s2378_s27 }
 0x3ba   : > { %1735 = vrot.lane.b32.xlu1 %v1652_v49, %s2374_s23  ;;  %1754 = vrot.lane.b32.xlu0 %v1651_v62, %s2380_s29 }
 0x3be   : > { %1707 = vrot.lane.b32.xlu1 %v1652_v49, %s2376_s25  ;;  %1721 = vrot.lane.b32.xlu0 %v1652_v49, %s2375_s24 }
 0x3c2   : > { %1679 = vrot.lane.b32.xlu1 %v1652_v49, %s2378_s27  ;;  %1693 = vrot.lane.b32.xlu0 %v1652_v49, %s2377_s26 }
 0x3c6   : > { %1756 = vrot.lane.b32.xlu1 %v1652_v49, %s2380_s29  ;;  %1665 = vrot.lane.b32.xlu0 %v1652_v49, %s2379_s28 }
 0x3f2   : > { %v1716_v23 = vpop.permute.xlu0 %1715  ;;  %v1730_v48 = vpop.permute.xlu1 %1729 }
 0x3f6   : > { %v1688_v51 = vpop.permute.xlu0 %1687  ;;  %v1702_v52 = vpop.permute.xlu1 %1701 }
 0x3fa   : > { %v1660_v3 = vpop.permute.xlu0 %1659  ;;  %v1674_v55 = vpop.permute.xlu1 %1673 }
 0x3fe   : > { %v1718_v57 = vpop.permute.xlu0 %1717  ;;  %v1732_v58 = vpop.permute.xlu1 %1731 }
 0x3ff   : > { %v1725_v29 = vsel %vm575_vm1, %v1716_v23, %v1718_v57  ;;  %v1739_v59 = vsel %vm593_vm0, %v1730_v48, %v1732_v58 }
 0x400   : > { %1800 = vrot.lane.b32.xlu0 %v1725_v29, %s2380_s29  ;;  %1810 = vrot.lane.b32.xlu1 %v1739_v59, %s2380_s29  ;;  %v2202_v29 = vld [vmem:[%s3311_s10] sm:$0xff] }
 0x402   : > { %v1690_v60 = vpop.permute.xlu0 %1689  ;;  %v1704_v41 = vpop.permute.xlu1 %1703 }
 0x403   : > { %v1697_v7 = vsel %vm539_vm3, %v1688_v51, %v1690_v60  ;;  %v1711_v1 = vsel %vm557_vm2, %v1702_v52, %v1704_v41 }
 0x404   : > { %1780 = vrot.lane.b32.xlu0 %v1697_v7, %s2380_s29  ;;  %1790 = vrot.lane.b32.xlu1 %v1711_v1, %s2380_s29 }
 0x406   : > { %v1662_v54 = vpop.permute.xlu0 %1661  ;;  %v1676_v42 = vpop.permute.xlu1 %1675 }
 0x407   : > { %v1669_v10 = vsel %vm503_vm5, %v1660_v3, %v1662_v54  ;;  %v1683_v31 = vsel %vm521_vm4, %v1674_v55, %v1676_v42 }
 0x408   : > { %1760 = vrot.lane.b32.xlu0 %v1669_v10, %s2380_s29  ;;  %1770 = vrot.lane.b32.xlu1 %v1683_v31, %s2380_s29 }
 0x40a   : > { %v3165_v45 = vpop.permute.xlu1 %1752 }
 0x414   : > { %v1734_v18 = vpop.permute.xlu0 %1733  ;;  %v1720_v30 = vpop.permute.xlu1 %1719 }
 0x415   : > { %v1740_v6 = vsel %vm593_vm0, %v1732_v58, %v1734_v18  ;;  %v1726_v4 = vsel %vm575_vm1, %v1718_v57, %v1720_v30  ;;  %v1117_v57 = vld [vmem:[%s3305_s4] sm:$0xff] }
 0x416   : > { %v1744_v58 = vld [vmem:[%s3309_s8] sm:$0xff] }
 0x418   : > { %v1738_v61 = vpop.permute.xlu0 %1737  ;;  %v1724_v2 = vpop.permute.xlu1 %1723 }
 0x419   : > { %1818 = vrot.lane.b32.xlu0 %v1738_v61, %s2380_s29  ;;  %1808 = vrot.lane.b32.xlu1 %v1724_v2, %s2380_s29 }
 0x41c   : > { %v1706_v33 = vpop.permute.xlu0 %1705  ;;  %v1692_v35 = vpop.permute.xlu1 %1691 }
 0x41d   : > { %v1698_v12 = vsel %vm539_vm3, %v1690_v60, %v1692_v35  ;;  %v1712_v26 = vsel %vm557_vm2, %v1704_v41, %v1706_v33 }
 0x420   : > { %v1710_v36 = vpop.permute.xlu0 %1709  ;;  %v1696_v32 = vpop.permute.xlu1 %1695 }
 0x421   : > { %1798 = vrot.lane.b32.xlu0 %v1710_v36, %s2380_s29  ;;  %1788 = vrot.lane.b32.xlu1 %v1696_v32, %s2380_s29 }
 0x424   : > { %v1678_v56 = vpop.permute.xlu0 %1677  ;;  %v1664_v38 = vpop.permute.xlu1 %1663 }
 0x425   : > { %v1670_v19 = vsel %vm503_vm5, %v1662_v54, %v1664_v38  ;;  %v1684_v62 = vsel %vm521_vm4, %v1676_v42, %v1678_v56 }
 0x428   : > { %v1682_v28 = vpop.permute.xlu0 %1681  ;;  %v1668_v34 = vpop.permute.xlu1 %1667 }
 0x429   : > { %1778 = vrot.lane.b32.xlu0 %v1682_v28, %s2380_s29  ;;  %1768 = vrot.lane.b32.xlu1 %v1668_v34, %s2380_s29 }
 0x42c   : > { %v1736_v53 = vpop.permute.xlu1 %1735  ;;  %v3181_v46 = vpop.permute.xlu0 %1754 }
 0x42d   : > { %1802 = vrot.lane.b32.xlu0 %v1726_v4, %s2380_s29  ;;  %1812 = vrot.lane.b32.xlu1 %v1740_v6, %s2380_s29  ;;  %v1741_v0 = vsel %vm593_vm0, %v1734_v18, %v1736_v53  ;;  %v1742_v13 = vsel %vm593_vm0, %v1736_v53, %v1738_v61  ;;  %vm2030_vm0 = vcmask 64512  }
 0x430   : > { %v1708_v15 = vpop.permute.xlu1 %1707  ;;  %v1722_v43 = vpop.permute.xlu0 %1721 }
 0x431   : > { %1782 = vrot.lane.b32.xlu0 %v1698_v12, %s2380_s29  ;;  %1792 = vrot.lane.b32.xlu1 %v1712_v26, %s2380_s29  ;;  %v1728_v16 = vsel %vm575_vm1, %v1722_v43, %v1724_v2  ;;  %v1727_v17 = vsel %vm575_vm1, %v1720_v30, %v1722_v43  ;;  %v1713_v20 = vsel %vm557_vm2, %v1706_v33, %v1708_v15  ;;  %vm2188_vm1 = vcmask 31744  }
 0x432   : > { %v1714_v47 = vsel %vm557_vm2, %v1708_v15, %v1710_v36 }
 0x434   : > { %v1680_v37 = vpop.permute.xlu1 %1679  ;;  %v1694_v22 = vpop.permute.xlu0 %1693 }
 0x435   : > { %1762 = vrot.lane.b32.xlu0 %v1670_v19, %s2380_s29  ;;  %1772 = vrot.lane.b32.xlu1 %v1684_v62, %s2380_s29  ;;  %v1700_v49 = vsel %vm539_vm3, %v1694_v22, %v1696_v32  ;;  %v1699_v23 = vsel %vm539_vm3, %v1692_v35, %v1694_v22  ;;  %v1685_v48 = vsel %vm521_vm4, %v1678_v56, %v1680_v37 }
 0x436   : > { %v1686_v51 = vsel %vm521_vm4, %v1680_v37, %v1682_v28 }
 0x438   : > { %v3188_v9 = vpop.permute.xlu1 %1756  ;;  %v1666_v52 = vpop.permute.xlu0 %1665 }
 0x439   : > { %v3194_v14 = vsel %vm690_vm6, %v3181_v46, %v3188_v9  ;;  %1814 = vrot.lane.b32.xlu0 %v1741_v0, %s2380_s29  ;;  %1816 = vrot.lane.b32.xlu1 %v1742_v13, %s2380_s29  ;;  %v1672_v3 = vsel %vm503_vm5, %v1666_v52, %v1668_v34  ;;  %v1671_v55 = vsel %vm503_vm5, %v1664_v38, %v1666_v52 }
 0x43d   : > { %1806 = vrot.lane.b32.xlu0 %v1728_v16, %s2380_s29  ;;  %1804 = vrot.lane.b32.xlu1 %v1727_v17, %s2380_s29 }
 0x441   : > { %1794 = vrot.lane.b32.xlu0 %v1713_v20, %s2380_s29  ;;  %1796 = vrot.lane.b32.xlu1 %v1714_v47, %s2380_s29 }
 0x445   : > { %1786 = vrot.lane.b32.xlu0 %v1700_v49, %s2380_s29  ;;  %1784 = vrot.lane.b32.xlu1 %v1699_v23, %s2380_s29 }
 0x449   : > { %1774 = vrot.lane.b32.xlu0 %v1685_v48, %s2380_s29  ;;  %1776 = vrot.lane.b32.xlu1 %v1686_v51, %s2380_s29 }
 0x44d   : > { %1766 = vrot.lane.b32.xlu0 %v1672_v3, %s2380_s29  ;;  %1764 = vrot.lane.b32.xlu1 %v1671_v55, %s2380_s29 }
 0x451   : > { %1758 = vrot.lane.b32.xlu0 %v3124_v44, %s2380_s29  ;;  %1750 = vrot.lane.b32.xlu1 %v3090_v63, %s2380_s29 }
 0x455   : > { %1120 = vperm.xlu0 %2359, %v1117_v57   ;;  %1747 = vperm.xlu1 %2360, %v1744_v58  }
 0x459   : > { %2205 = vperm.xlu0 %2359, %v2202_v29  }
 0x472   : > { %v1801_v59 = vpop.permute.xlu0 %1800  ;;  %v1811_v44 = vpop.permute.xlu1 %1810 }
 0x476   : > { %v1781_v60 = vpop.permute.xlu0 %1780  ;;  %v1791_v41 = vpop.permute.xlu1 %1790 }
 0x47a   : > { %v3231_v63 = vpop.permute.xlu0 %1760  ;;  %v1771_v7 = vpop.permute.xlu1 %1770 }
 0x48b   : > { %v1819_v1 = vpop.permute.xlu0 %1818  ;;  %v1809_v54 = vpop.permute.xlu1 %1808 }
 0x493   : > { %v1799_v42 = vpop.permute.xlu0 %1798  ;;  %v1789_v10 = vpop.permute.xlu1 %1788 }
 0x49b   : > { %v1779_v31 = vpop.permute.xlu0 %1778  ;;  %v1769_v18 = vpop.permute.xlu1 %1768 }
 0x49f   : > { %v1803_v30 = vpop.permute.xlu0 %1802  ;;  %v1813_v61 = vpop.permute.xlu1 %1812 }
 0x4a0   : > { %v1844_v28 = vsel %vm690_vm6, %v1811_v44, %v1813_v61  ;;  %v1840_v19 = vsel %vm690_vm6, %v1801_v59, %v1803_v30 }
 0x4a3   : > { %v1783_v2 = vpop.permute.xlu0 %1782  ;;  %v1793_v33 = vpop.permute.xlu1 %1792 }
 0x4a4   : > { %v1836_v13 = vsel %vm690_vm6, %v1791_v41, %v1793_v33  ;;  %v1832_v23 = vsel %vm690_vm6, %v1781_v60, %v1783_v2 }
 0x4a7   : > { %v1763_v35 = vpop.permute.xlu0 %1762  ;;  %v1773_v36 = vpop.permute.xlu1 %1772 }
 0x4a8   : > { %v1828_v3 = vsel %vm690_vm6, %v1771_v7, %v1773_v36  ;;  %v1824_v41 = vsel %vm690_vm6, %v3231_v63, %v1763_v35 }
 0x4ab   : > { %v1815_v32 = vpop.permute.xlu0 %1814  ;;  %v1817_v56 = vpop.permute.xlu1 %1816 }
 0x4ac   : > { %v1845_v38 = vsel %vm690_vm6, %v1813_v61, %v1815_v32  ;;  %v1846_v34 = vsel %vm690_vm6, %v1815_v32, %v1817_v56  ;;  %v1847_v6 = vsel %vm690_vm6, %v1817_v56, %v1819_v1  ;;  %v1821_v1 = vsel %vm690_vm6, %v3165_v45, %v3181_v46 }
 0x4ad   : > { %1897 = vmatprep.subr.mxu0 %v1845_v38  ;;  %1968 = vmatprep.subr.mxu1 %v1847_v6 }
 0x4ae   : > { %1898 = vmatpush1.msra.mxu0 %v1844_v28  ;;  %1969 = vmatpush1.msra.mxu1 %v1846_v34 }
 0x4af   : > { %v1807_v4 = vpop.permute.xlu0 %1806  ;;  %v1805_v53 = vpop.permute.xlu1 %1804 }
 0x4b0   : > { %v1843_v12 = vsel %vm690_vm6, %v1807_v4, %v1809_v54  ;;  %v1842_v15 = vsel %vm690_vm6, %v1805_v53, %v1807_v4  ;;  %v1841_v26 = vsel %vm690_vm6, %v1803_v30, %v1805_v53 }
 0x4b1   : > { %1970 = vmatprep.subr.mxu1 %v1843_v12  ;;  %1899 = vmatprep.subr.mxu0 %v1841_v26 }
 0x4b2   : > { %1971 = vmatpush1.msra.mxu1 %v1842_v15  ;;  %1900 = vmatpush1.msra.mxu0 %v1840_v19 }
 0x4b3   : > { %v1795_v37 = vpop.permute.xlu0 %1794  ;;  %v1797_v62 = vpop.permute.xlu1 %1796 }
 0x4b4   : > { %v1837_v0 = vsel %vm690_vm6, %v1793_v33, %v1795_v37  ;;  %v1838_v43 = vsel %vm690_vm6, %v1795_v37, %v1797_v62  ;;  %v1839_v16 = vsel %vm690_vm6, %v1797_v62, %v1799_v42 }
 0x4b5   : > { %1901 = vmatprep.subr.mxu0 %v1837_v0  ;;  %1972 = vmatprep.subr.mxu1 %v1839_v16 }
 0x4b6   : > { %1902 = vmatpush1.msra.mxu0 %v1836_v13  ;;  %1973 = vmatpush1.msra.mxu1 %v1838_v43 }
 0x4b7   : > { %v1787_v17 = vpop.permute.xlu0 %1786  ;;  %v1785_v20 = vpop.permute.xlu1 %1784 }
 0x4b8   : > { %v1835_v47 = vsel %vm690_vm6, %v1787_v17, %v1789_v10  ;;  %v1834_v22 = vsel %vm690_vm6, %v1785_v20, %v1787_v17  ;;  %v1833_v49 = vsel %vm690_vm6, %v1783_v2, %v1785_v20  ;;  %v1743_v10 = vld [vmem:[%s3308_s7] sm:$0xff] }
 0x4b9   : > { %1974 = vmatprep.subr.mxu1 %v1835_v47  ;;  %1903 = vmatprep.subr.mxu0 %v1833_v49 }
 0x4ba   : > { %1975 = vmatpush1.msra.mxu1 %v1834_v22  ;;  %1904 = vmatpush1.msra.mxu0 %v1832_v23 }
 0x4bb   : > { %v1775_v48 = vpop.permute.xlu0 %1774  ;;  %v1777_v51 = vpop.permute.xlu1 %1776 }
 0x4bc   : > { %v1829_v52 = vsel %vm690_vm6, %v1773_v36, %v1775_v48  ;;  %v1830_v55 = vsel %vm690_vm6, %v1775_v48, %v1777_v51  ;;  %v1831_v57 = vsel %vm690_vm6, %v1777_v51, %v1779_v31 }
 0x4bd   : > { %1905 = vmatprep.subr.mxu0 %v1829_v52  ;;  %1976 = vmatprep.subr.mxu1 %v1831_v57 }
 0x4be   : > { %1906 = vmatpush1.msra.mxu0 %v1828_v3  ;;  %1977 = vmatpush1.msra.mxu1 %v1830_v55 }
 0x4bf   : > { %v1767_v58 = vpop.permute.xlu0 %1766  ;;  %v1765_v29 = vpop.permute.xlu1 %1764 }
 0x4c0   : > { %v1827_v59 = vsel %vm690_vm6, %v1767_v58, %v1769_v18  ;;  %v1826_v44 = vsel %vm690_vm6, %v1765_v29, %v1767_v58  ;;  %v1825_v60 = vsel %vm690_vm6, %v1763_v35, %v1765_v29 }
 0x4c1   : > { %1978 = vmatprep.subr.mxu1 %v1827_v59  ;;  %1907 = vmatprep.subr.mxu0 %v1825_v60 }
 0x4c2   : > { %1979 = vmatpush1.msra.mxu1 %v1826_v44  ;;  %1908 = vmatpush1.msra.mxu0 %v1824_v41 }
 0x4c3   : > { %v1759_v7 = vpop.permute.xlu0 %1758  ;;  %1909 = vmatprep.subr.mxu0 %v1821_v1  ;;  %v1751_v54 = vpop.permute.xlu1 %1750 }
 0x4c4   : > { %v1823_v42 = vsel %vm690_vm6, %v3188_v9, %v1759_v7  ;;  %v1820_v63 = vsel %vm690_vm6, %v1751_v54, %v3165_v45 }
 0x4c5   : > { %1980 = vmatprep.subr.mxu1 %v1823_v42  ;;  %1910 = vmatpush1.msra.mxu0 %v1820_v63 }
 0x4c6   : > { %1981 = vmatpush1.msra.mxu1 %v3194_v14  ;;  %2318 = vmatmul.mubr.msk.f32.vlgmr.msra.gmra.mxu0 %vm768_vm7, %v1743_v10 }
 0x4c7   : > { %2319 = vmatmul.mubr.msk.f32.vlgmr.msra.gmra.mxu1 %vm768_vm7, %v1743_v10  ;;  %2098 = vmatprep.mubr.f32.mxu0 %v2381_v11 }
 0x4c8   : > { %2169 = vmatprep.mubr.f32.mxu1 %v2381_v11 }
 0x4d0   : > { %v1121_v46 = vpop.permute.xlu0 %1120  ;;  %v1748_v9 = vpop.permute.xlu1 %1747 }
 0x4d1   : > { %v1195_v45 = vadd.f32 %v3081_v50, %v1121_v46  ;;  %v1266_v2 = vadd.f32 %v3116_v27, %v1121_v46  ;;  %v1193_v14 = vadd.f32 %v3079_v25, %v1121_v46  ;;  %v1264_v33 = vadd.f32 %v3113_v5, %v1121_v46  ;;  %v2025_v25 = vld [vmem:[%s3310_s9] sm:$0xff] }
 0x4d3   : > { %v1269_v28 = vmax.f32 %v1195_v45, 0.0  ;;  %v1271_v6 = vmax.f32 %v1266_v2, 0.0  ;;  %v1268_v53 = vmax.f32 %v1193_v14, 0.0  ;;  %v1270_v12 = vmax.f32 %v1264_v33, 0.0 }
 0x4d4   : > { %v2206_v0 = vpop.permute.xlu0 %2205 }
 0x586   : > { %v1945_v31 = vpop.f32.mrf.mxu0 }
 0x587   : > { %v2016_v18 = vpop.f32.mrf.mxu1  ;;  %v1946_v30 = vadd.f32 %v1945_v31, %v1748_v9 }
 0x588   : > { %v2017_v61 = vadd.f32 %v2016_v18, %v1748_v9  ;;  %v1947_v35 = vpop.f32.mrf.mxu0 }
 0x589   : > { %v2018_v36 = vpop.f32.mrf.mxu1  ;;  %v1948_v32 = vadd.f32 %v1947_v35, %v1748_v9  ;;  %v2021_v38 = vmax.f32 %v1946_v30, 0.0 }
 0x58a   : > { %v2019_v56 = vadd.f32 %v2018_v36, %v1748_v9  ;;  %v2023_v11 = vmax.f32 %v2017_v61, 0.0 }
 0x58b   : > { %v2022_v34 = vmax.f32 %v1948_v32, 0.0  ;;  %v2026_v27 = vadd.f32 %v2021_v38, %v1268_v53 }
 0x58c   : > { %v2024_v4 = vmax.f32 %v2019_v56, 0.0  ;;  %v2028_v26 = vadd.f32 %v2023_v11, %v1270_v12 }
 0x58d   : > { %v2027_v15 = vadd.f32 %v2022_v34, %v1269_v28 }
 0x58e   : > { %v2029_v50 = vadd.f32 %v2024_v4, %v1271_v6 }
 0x58f   : > { %2064 = vmatprep.subr.mxu0 %v2027_v15 }
 0x590   : > { %2135 = vmatprep.subr.mxu1 %v2029_v50  ;;  %2065 = vmatpush1.msra.mxu0 %v2026_v27 }
 0x591   : > { %2136 = vmatpush1.msra.mxu1 %v2028_v26  ;;  %2320 = vmatmul.mubr.msk.f32.vlgmr.msra.gmra.mxu0 %vm2030_vm0, %v2025_v25 }
 0x592   : > { %2321 = vmatmul.mubr.msk.f32.vlgmr.msra.gmra.mxu1 %vm2030_vm0, %v2025_v25 }
 0x651   : > { %v2100_v5 = vpop.f32.mrf.mxu0 }
 0x652   : > { %2180 = vrot.lane.b32.xlu1 %v2100_v5, %s2388_s30  ;;  %v2171_v37 = vpop.f32.mrf.mxu1 }
 0x653   : > { %v2102_v19 = vpop.f32.mrf.mxu0 }
 0x654   : > { %2182 = vrot.lane.b32.xlu0 %v2102_v19, %s2388_s30  ;;  %v2173_v62 = vpop.f32.mrf.mxu1 }
 0x656   : > { %2184 = vrot.lane.b32.xlu1 %v2171_v37, %s2388_s30 }
 0x658   : > { %2186 = vrot.lane.b32.xlu0 %v2173_v62, %s2388_s30 }
 0x6c4   : > { %v2181_v13 = vpop.permute.xlu1 %2180 }
 0x6c5   : > { %v2197_v43 = vadd.f32 %v2984_v21, %v2181_v13 }
 0x6c6   : > { %v2183_v16 = vpop.permute.xlu0 %2182 }
 0x6c7   : > { %v2208_v17 = vadd.f32 %v2206_v0, %v2197_v43  ;;  %v2189_v20 = vsel %vm2188_vm1, %v2181_v13, %v2183_v16 }
 0x6c8   : > { %v2198_v47 = vadd.f32 %v3059_v8, %v2189_v20  ;;  %v2185_v22 = vpop.permute.xlu1 %2184 }
 0x6c9   : > { %v2190_v49 = vsel %vm2188_vm1, %v2183_v16, %v2185_v22  ;;  %2218 = vrot.lane.b32.xlu1 %v2208_v17, %s2376_s25 }
 0x6ca   : > { %v2209_v23 = vadd.f32 %v2206_v0, %v2198_v47  ;;  %v2199_v48 = vadd.f32 %v3054_v39, %v2190_v49  ;;  %v2187_v51 = vpop.permute.xlu0 %2186 }
 0x6cb   : > { %v2191_v52 = vsel %vm2188_vm1, %v2185_v22, %v2187_v51  ;;  %v2201_v21 = vadd.f32 %v3065_v40, %v2187_v51 }
 0x6cc   : > { %v2210_v3 = vadd.f32 %v2206_v0, %v2199_v48  ;;  %v2200_v55 = vadd.f32 %v3070_v24, %v2191_v52  ;;  %2220 = vrot.lane.b32.xlu0 %v2209_v23, %s2376_s25 }
 0x6cd   : > { %v2212_v8 = vadd.f32 %v2206_v0, %v2201_v21 }
 0x6ce   : > { %v2211_v57 = vadd.f32 %v2206_v0, %v2200_v55  ;;  %2222 = vrot.lane.b32.xlu1 %v2210_v3, %s2376_s25 }
 0x6d0   : > { %2224 = vrot.lane.b32.xlu0 %v2211_v57, %s2376_s25 }
 0x6d2   : > { %2226 = vrot.lane.b32.xlu1 %v2212_v8, %s2376_s25 }
 0x73b   : > { %v2219_v58 = vpop.permute.xlu1 %2218 }
 0x73e   : > { %v2221_v39 = vpop.permute.xlu0 %2220 }
 0x73f   : > { %v2228_v24 = vsel %vm557_vm2, %v2219_v58, %v2221_v39 }
 0x740   : > { %2236 = vst [vmem:[%s386_s15] sm:$0xff] %v2228_v24  ;;  %v2223_v40 = vpop.permute.xlu1 %2222 }
 0x741   : > { %v2229_v29 = vsel %vm557_vm2, %v2221_v39, %v2223_v40 }
 0x742   : > { %2237 = vst [vmem:[%s386_s15 + $0x8] sm:$0xff] %v2229_v29  ;;  %v2225_v59 = vpop.permute.xlu0 %2224 }
 0x743   : > { %v2230_v44 = vsel %vm557_vm2, %v2223_v40, %v2225_v59 }
 0x744   : > { %2238 = vst [vmem:[%s386_s15 + $0x10] sm:$0xff] %v2230_v44  ;;  %v2227_v60 = vpop.permute.xlu1 %2226 }
 0x745   : > { %v2231_v41 = vsel %vm557_vm2, %v2225_v59, %v2227_v60 }
 0x746   : > { %2239 = vst [vmem:[%s386_s15 + $0x18] sm:$0xff] %v2231_v41 }
 0x747 PF: > { %s21_s17 = sadd.s32 1, %s2372_s17  }
 0x748   : > { %p18_p4 = scmp.ge.s32.totalorder %s21_s17, 4  }
 0x74a   :  { %20 = sbr.rel (!%p18_p4) target bundleno = 1 (0x1), region = 94 }

</bundles_post_ra>
